<compile_context>
chip_gen: v7x
topology: tpu7x:2x2x1
jax: 0.10.0
libtpu: 0.0.40
codegen_flags: <defaults>
</compile_context>

<pallas_src>
import functools

import jax
import jax.numpy as jnp
import numpy as np
from jax import lax
from jax.experimental import pallas as pl
from jax.experimental.pallas import tpu as pltpu

LANE = 128
CH_ALIGN = 16  # bf16 sublane packing: keep channel blocks (16,128)-tile aligned


def _round_up(x, m):
    return ((x + m - 1) // m) * m


def _tap_masks(H, W):
    """(9, H*W) f32 validity mask per 3x3 tap (ky,kx), taps in row-major order."""
    HW = H * W
    yy, xx = np.meshgrid(np.arange(H), np.arange(W), indexing="ij")
    yy, xx = yy.reshape(HW), xx.reshape(HW)
    masks = np.zeros((9, HW), np.float32)
    k = 0
    for ky in range(3):
        for kx in range(3):
            dy, dx = ky - 1, kx - 1
            ok = ((yy + dy >= 0) & (yy + dy < H)
                  & (xx + dx >= 0) & (xx + dx < W))
            masks[k] = ok.astype(np.float32)
            k += 1
    return masks


def _pool_select_padded(H, W, ncols):
    """(H*W, ncols) 0/1 matrix picking the top-left pixel of every 2x2 pooling
    window (stride-2 subsample of the per-pixel window max via one matmul).
    ncols >= (H//2)*(W//2); extra columns are zero (lane-dense output pad)."""
    HW, h2, w2 = H * W, H // 2, W // 2
    sel = np.zeros((HW, ncols), np.float32)
    for y2 in range(h2):
        for x2 in range(w2):
            sel[(2 * y2) * W + 2 * x2, y2 * w2 + x2] = 1.0
    return sel


# ---------------------------------------------------------------------------
# Fused kernel: conv x4 + maxpool(2,2) + relu for one image.
#   x_ref    : (1, C1, HW)       input activation (channels on sublanes)
#   w*_ref   : (C2, 9*Cin) bf16  repacked conv weights (tap-major, then chan)
#   b*_ref   : (C2, 1)     f32
#   mask_ref : (9*Cmax, HW) f32  boundary masks, pre-broadcast per channel
#   sel_ref  : (HW, n_out) f32   0/1 stride-2 subsample matrix (lane-padded)
#   o_ref    : (1, C2, n_out)
#   tap_ref  : (9*Cmax, HW) bf16 persistent VMEM tap slab (scratch)
# ---------------------------------------------------------------------------
def _vgg4_fused_kernel(x_ref, w1_ref, b1_ref, w2_ref, b2_ref, w3_ref, b3_ref,
                       w4_ref, b4_ref, mask_ref, sel_ref, o_ref, tap_ref,
                       *, H, W, C1, C2, Cmax):
    HW = H * W

    def conv3x3(a, C, w_ref, b_ref):
        # a: (C, HW) f32.  Write the 9 shifted+masked taps straight into the
        # persistent bf16 slab (one aligned store each, no concatenate copy),
        # then a single K=9*C bf16 MXU matmul -> lane-dense f32 (C2, HW).
        k = 0
        for ky in range(3):
            for kx in range(3):
                d = (ky - 1) * W + (kx - 1)           # flat-index shift of tap
                if d == 0:
                    t = a                             # center tap: no shift/mask
                else:
                    t = (pltpu.roll(a, shift=(-d) % HW, axis=1)  # t[p] = a[p+d]
                         * mask_ref[k * Cmax:k * Cmax + C, :])   # zero halo
                tap_ref[k * C:(k + 1) * C, :] = t.astype(tap_ref.dtype)
                k += 1
        return (jnp.dot(w_ref[...], tap_ref[0:9 * C, :],
                        preferred_element_type=jnp.float32)
                + b_ref[...])                         # (C2, HW) f32

    a = x_ref[0]                                      # (C1, HW)
    a = conv3x3(a, C1, w1_ref, b1_ref)
    a = conv3x3(a, C2, w2_ref, b2_ref)
    a = conv3x3(a, C2, w3_ref, b3_ref)
    a = conv3x3(a, C2, w4_ref, b4_ref)

    # Fused MaxPool2d(kernel=2, stride=2) + ReLU epilogue.  The rolls wrap at
    # row/image boundaries; safe because sel only selects top-left pixels at
    # even x <= W-2, y <= H-2 (H, W asserted even in the wrapper).
    m = jnp.maximum(a, pltpu.roll(a, shift=HW - 1, axis=1))      # a[p+1]
    m = jnp.maximum(m, pltpu.roll(a, shift=HW - W, axis=1))      # a[p+W]
    m = jnp.maximum(m, pltpu.roll(a, shift=HW - W - 1, axis=1))  # a[p+W+1]
    m = jnp.maximum(m, 0.0)
    # Stride-2 subsample of the window max via 0/1 selection matmul into a
    # 128-lane-padded output (unmasked lane-dense store).
    o_ref[0] = jnp.dot(m, sel_ref[...],
                       preferred_element_type=jnp.float32).astype(o_ref.dtype)


@jax.jit
def vggnet4_forward(x_nchw, params):
    """conv -> conv2 -> conv3 -> conv4 -> maxpool(2,2) -> relu.  NCHW in/out."""
    N, Cin, H, W = x_nchw.shape
    assert H % 2 == 0 and W % 2 == 0, "MaxPool2d(2,2) path assumes even H, W"
    HW, h2, w2 = H * W, H // 2, W // 2
    Cout = params[0][0].shape[0]
    C1 = _round_up(Cin, CH_ALIGN)       # padded input channels (layer 1)
    C2 = _round_up(Cout, CH_ALIGN)      # padded channels (layers 2-4 / output)
    Cmax = max(C1, C2)
    n_out = _round_up(h2 * w2, LANE)    # lane-dense output width

    # NCHW -> (N, C1, H*W): channels on sublanes, flattened spatial on lanes.
    x_flat = x_nchw.reshape(N, Cin, HW)
    if C1 != Cin:
        x_flat = jnp.pad(x_flat, ((0, 0), (0, C1 - Cin), (0, 0)))

    # Repack each conv's weights to bf16 (C2, 9*Cin_eff) matching the in-kernel
    # tap order [(ky,kx) row-major, then channel]; biases (f32) to (C2, 1).
    wts, bs = [], []
    for li, (w, b) in enumerate(params):
        co, ci, kh, kw = w.shape
        assert (kh, kw) == (3, 3), "kernel assumes 3x3 convs with padding=1"
        ci_eff = C1 if li == 0 else C2
        wt = jnp.transpose(w, (0, 2, 3, 1))            # (Cout, 3, 3, Cin)
        if ci_eff != ci:
            wt = jnp.pad(wt, ((0, 0), (0, 0), (0, 0), (0, ci_eff - ci)))
        wt = wt.reshape(co, 9 * ci_eff)
        if C2 != co:
            wt = jnp.pad(wt, ((0, C2 - co), (0, 0)))
        wts.append(wt.astype(jnp.bfloat16))
        bb = b.reshape(co, 1)
        if C2 != co:
            bb = jnp.pad(bb, ((0, C2 - co), (0, 0)))
        bs.append(bb)

    # Boundary masks pre-broadcast per channel (no in-kernel broadcast_in_dim).
    masks = _tap_masks(H, W)                                     # (9, HW)
    mask_slab = jnp.asarray(
        np.repeat(masks[:, None, :], Cmax, axis=1).reshape(9 * Cmax, HW))
    sel = jnp.asarray(_pool_select_padded(H, W, n_out))          # (HW, n_out)

    in_specs = [pl.BlockSpec((1, C1, HW), lambda n: (n, 0, 0))]
    for wt, bb in zip(wts, bs):
        in_specs.append(pl.BlockSpec(wt.shape, lambda n: (0, 0)))
        in_specs.append(pl.BlockSpec(bb.shape, lambda n: (0, 0)))
    in_specs.append(pl.BlockSpec(mask_slab.shape, lambda n: (0, 0)))
    in_specs.append(pl.BlockSpec(sel.shape, lambda n: (0, 0)))

    out_flat = pl.pallas_call(
        functools.partial(_vgg4_fused_kernel, H=H, W=W,
                          C1=C1, C2=C2, Cmax=Cmax),
        out_shape=jax.ShapeDtypeStruct((N, C2, n_out), x_nchw.dtype),
        grid=(N,),
        in_specs=in_specs,
        out_specs=pl.BlockSpec((1, C2, n_out), lambda n: (n, 0, 0)),
        scratch_shapes=[pltpu.VMEM((9 * Cmax, HW), jnp.bfloat16)],
        compiler_params=pltpu.CompilerParams(
            dimension_semantics=("parallel",)),
    )(x_flat, wts[0], bs[0], wts[1], bs[1], wts[2], bs[2], wts[3], bs[3],
      mask_slab, sel)
    # Strip channel / lane padding and restore NCHW.
    return out_flat[:, :Cout, :h2 * w2].reshape(N, Cout, h2, w2)


# ---------------------------------------------------------------------------
# Parameter init (mimics nn.Conv2d kaiming-uniform defaults) + XLA reference.
# ---------------------------------------------------------------------------
def init_params(key, in_size, out_size, kernels):
    params = []
    cin = in_size
    for _ in range(4):
        key, kw, kb = jax.random.split(key, 3)
        fan_in = cin * kernels * kernels
        bound = 1.0 / np.sqrt(fan_in)
        w = jax.random.uniform(
            kw, (out_size, cin, kernels, kernels), jnp.float32, -bound, bound)
        b = jax.random.uniform(kb, (out_size,), jnp.float32, -bound, bound)
        params.append((w, b))
        cin = out_size
    return params


def vggnet4_reference(x_nchw, params):
    x = x_nchw
    for (w, b) in params:
        x = lax.conv_general_dilated(
            x, w, window_strides=(1, 1), padding=((1, 1), (1, 1)),
            dimension_numbers=("NCHW", "OIHW", "NCHW"),
        ) + b[None, :, None, None]
    x = lax.reduce_window(
        x, -jnp.inf, lax.max, (1, 1, 2, 2), (1, 1, 2, 2), "VALID")
    return jnp.maximum(x, 0.0)


if __name__ == "__main__":
    key = jax.random.PRNGKey(0)
    in_size, out_size, kernels = 4, 8, 3
    N, H, W = 2, 16, 16

    key, kx = jax.random.split(key)
    x = jax.random.normal(kx, (N, in_size, H, W), jnp.float32)
    params = init_params(key, in_size, out_size, kernels)

    out = jax.block_until_ready(vggnet4_forward(x, params))
    ref = jax.block_until_ready(vggnet4_reference(x, params))

    assert out.shape == (N, out_size, H // 2, W // 2), out.shape
    # Tolerance allows for bf16 MXU operands (f32 accumulation) through the
    # 4-conv chain vs. XLA's f32 convolution reference.
    np.testing.assert_allclose(np.asarray(out), np.asarray(ref),
                               rtol=2e-2, atol=1e-2)
    print("KERNEL_OK")
</pallas_src>

<mosaic_0001>
module attributes {stable_mosaic.version = 11 : i64} {
  func.func @_vgg4_fused_kernel(%arg0: i32, %arg1: memref<1x16x256xf32, #tpu.memory_space<vmem>>, %arg2: memref<16x144xbf16, #tpu.memory_space<vmem>>, %arg3: memref<16x1xf32, #tpu.memory_space<vmem>>, %arg4: memref<16x144xbf16, #tpu.memory_space<vmem>>, %arg5: memref<16x1xf32, #tpu.memory_space<vmem>>, %arg6: memref<16x144xbf16, #tpu.memory_space<vmem>>, %arg7: memref<16x1xf32, #tpu.memory_space<vmem>>, %arg8: memref<16x144xbf16, #tpu.memory_space<vmem>>, %arg9: memref<16x1xf32, #tpu.memory_space<vmem>>, %arg10: memref<144x256xf32, #tpu.memory_space<vmem>>, %arg11: memref<256x128xf32, #tpu.memory_space<vmem>>, %arg12: memref<1x16x128xf32, #tpu.memory_space<vmem>>, %arg13: memref<144x256xbf16, #tpu.memory_space<vmem>>) attributes {dimension_semantics = [#tpu.dimension_semantics<parallel>], iteration_bounds = array<i64: 2>, scalar_prefetch = 0 : i64, scratch_operands = 1 : i64, tpu.core_type = #tpu.core_type<tc>, window_params = [{transform_indices = @transform_0, window_bounds = array<i64: 1, 16, 256>}, {pipeline_mode = #tpu.pipeline_mode<synchronous>, transform_indices = @transform_1, window_bounds = array<i64: 16, 144>}, {pipeline_mode = #tpu.pipeline_mode<synchronous>, transform_indices = @transform_2, window_bounds = array<i64: 16, 1>}, {pipeline_mode = #tpu.pipeline_mode<synchronous>, transform_indices = @transform_3, window_bounds = array<i64: 16, 144>}, {pipeline_mode = #tpu.pipeline_mode<synchronous>, transform_indices = @transform_4, window_bounds = array<i64: 16, 1>}, {pipeline_mode = #tpu.pipeline_mode<synchronous>, transform_indices = @transform_5, window_bounds = array<i64: 16, 144>}, {pipeline_mode = #tpu.pipeline_mode<synchronous>, transform_indices = @transform_6, window_bounds = array<i64: 16, 1>}, {pipeline_mode = #tpu.pipeline_mode<synchronous>, transform_indices = @transform_7, window_bounds = array<i64: 16, 144>}, {pipeline_mode = #tpu.pipeline_mode<synchronous>, transform_indices = @transform_8, window_bounds = array<i64: 16, 1>}, {pipeline_mode = #tpu.pipeline_mode<synchronous>, transform_indices = @transform_9, window_bounds = array<i64: 144, 256>}, {pipeline_mode = #tpu.pipeline_mode<synchronous>, transform_indices = @transform_10, window_bounds = array<i64: 256, 128>}, {transform_indices = @transform_11, window_bounds = array<i64: 1, 16, 128>}]} {
    %c0 = arith.constant 0 : index
    %c0_0 = arith.constant 0 : index
    %c0_1 = arith.constant 0 : index
    %0 = vector.load %arg1[%c0, %c0_0, %c0_1] : memref<1x16x256xf32, #tpu.memory_space<vmem>>, vector<1x16x256xf32>
    %1 = vector.shape_cast %0 : vector<1x16x256xf32> to vector<16x256xf32>
    %c17_i32 = arith.constant 17 : i32
    %2 = tpu.dynamic_rotate %1 by %c17_i32 dim 1 : vector<16x256xf32>, i32 -> vector<16x256xf32>
    %c0_2 = arith.constant 0 : index
    %c0_3 = arith.constant 0 : index
    %3 = vector.load %arg10[%c0_2, %c0_3] : memref<144x256xf32, #tpu.memory_space<vmem>>, vector<16x256xf32>
    %4 = arith.mulf %2, %3 : vector<16x256xf32>
    %5 = arith.truncf %4 : vector<16x256xf32> to vector<16x256xbf16>
    %c0_4 = arith.constant 0 : index
    %c0_5 = arith.constant 0 : index
    %6 = vector.load %arg13[%c0_4, %c0_5] : memref<144x256xbf16, #tpu.memory_space<vmem>>, vector<16x256xbf16>
    tpu.vector_store %arg13[%c0_4, %c0_5], %5 {strides = array<i32>} : memref<144x256xbf16, #tpu.memory_space<vmem>>, vector<16x256xbf16>,
    %c16_i32 = arith.constant 16 : i32
    %7 = tpu.dynamic_rotate %1 by %c16_i32 dim 1 : vector<16x256xf32>, i32 -> vector<16x256xf32>
    %c16 = arith.constant 16 : index
    %c0_6 = arith.constant 0 : index
    %8 = vector.load %arg10[%c16, %c0_6] : memref<144x256xf32, #tpu.memory_space<vmem>>, vector<16x256xf32>
    %9 = arith.mulf %7, %8 : vector<16x256xf32>
    %10 = arith.truncf %9 : vector<16x256xf32> to vector<16x256xbf16>
    %c16_7 = arith.constant 16 : index
    %c0_8 = arith.constant 0 : index
    %11 = vector.load %arg13[%c16_7, %c0_8] : memref<144x256xbf16, #tpu.memory_space<vmem>>, vector<16x256xbf16>
    tpu.vector_store %arg13[%c16_7, %c0_8], %10 {strides = array<i32>} : memref<144x256xbf16, #tpu.memory_space<vmem>>, vector<16x256xbf16>,
    %c15_i32 = arith.constant 15 : i32
    %12 = tpu.dynamic_rotate %1 by %c15_i32 dim 1 : vector<16x256xf32>, i32 -> vector<16x256xf32>
    %c32 = arith.constant 32 : index
    %c0_9 = arith.constant 0 : index
    %13 = vector.load %arg10[%c32, %c0_9] : memref<144x256xf32, #tpu.memory_space<vmem>>, vector<16x256xf32>
    %14 = arith.mulf %12, %13 : vector<16x256xf32>
    %15 = arith.truncf %14 : vector<16x256xf32> to vector<16x256xbf16>
    %c32_10 = arith.constant 32 : index
    %c0_11 = arith.constant 0 : index
    %16 = vector.load %arg13[%c32_10, %c0_11] : memref<144x256xbf16, #tpu.memory_space<vmem>>, vector<16x256xbf16>
    tpu.vector_store %arg13[%c32_10, %c0_11], %15 {strides = array<i32>} : memref<144x256xbf16, #tpu.memory_space<vmem>>, vector<16x256xbf16>,
    %c1_i32 = arith.constant 1 : i32
    %17 = tpu.dynamic_rotate %1 by %c1_i32 dim 1 : vector<16x256xf32>, i32 -> vector<16x256xf32>
    %c48 = arith.constant 48 : index
    %c0_12 = arith.constant 0 : index
    %18 = vector.load %arg10[%c48, %c0_12] : memref<144x256xf32, #tpu.memory_space<vmem>>, vector<16x256xf32>
    %19 = arith.mulf %17, %18 : vector<16x256xf32>
    %20 = arith.truncf %19 : vector<16x256xf32> to vector<16x256xbf16>
    %c48_13 = arith.constant 48 : index
    %c0_14 = arith.constant 0 : index
    %21 = vector.load %arg13[%c48_13, %c0_14] : memref<144x256xbf16, #tpu.memory_space<vmem>>, vector<16x256xbf16>
    tpu.vector_store %arg13[%c48_13, %c0_14], %20 {strides = array<i32>} : memref<144x256xbf16, #tpu.memory_space<vmem>>, vector<16x256xbf16>,
    %22 = arith.truncf %1 : vector<16x256xf32> to vector<16x256xbf16>
    %c64 = arith.constant 64 : index
    %c0_15 = arith.constant 0 : index
    %23 = vector.load %arg13[%c64, %c0_15] : memref<144x256xbf16, #tpu.memory_space<vmem>>, vector<16x256xbf16>
    tpu.vector_store %arg13[%c64, %c0_15], %22 {strides = array<i32>} : memref<144x256xbf16, #tpu.memory_space<vmem>>, vector<16x256xbf16>,
    %c255_i32 = arith.constant 255 : i32
    %24 = tpu.dynamic_rotate %1 by %c255_i32 dim 1 : vector<16x256xf32>, i32 -> vector<16x256xf32>
    %c80 = arith.constant 80 : index
    %c0_16 = arith.constant 0 : index
    %25 = vector.load %arg10[%c80, %c0_16] : memref<144x256xf32, #tpu.memory_space<vmem>>, vector<16x256xf32>
    %26 = arith.mulf %24, %25 : vector<16x256xf32>
    %27 = arith.truncf %26 : vector<16x256xf32> to vector<16x256xbf16>
    %c80_17 = arith.constant 80 : index
    %c0_18 = arith.constant 0 : index
    %28 = vector.load %arg13[%c80_17, %c0_18] : memref<144x256xbf16, #tpu.memory_space<vmem>>, vector<16x256xbf16>
    tpu.vector_store %arg13[%c80_17, %c0_18], %27 {strides = array<i32>} : memref<144x256xbf16, #tpu.memory_space<vmem>>, vector<16x256xbf16>,
    %c241_i32 = arith.constant 241 : i32
    %29 = tpu.dynamic_rotate %1 by %c241_i32 dim 1 : vector<16x256xf32>, i32 -> vector<16x256xf32>
    %c96 = arith.constant 96 : index
    %c0_19 = arith.constant 0 : index
    %30 = vector.load %arg10[%c96, %c0_19] : memref<144x256xf32, #tpu.memory_space<vmem>>, vector<16x256xf32>
    %31 = arith.mulf %29, %30 : vector<16x256xf32>
    %32 = arith.truncf %31 : vector<16x256xf32> to vector<16x256xbf16>
    %c96_20 = arith.constant 96 : index
    %c0_21 = arith.constant 0 : index
    %33 = vector.load %arg13[%c96_20, %c0_21] : memref<144x256xbf16, #tpu.memory_space<vmem>>, vector<16x256xbf16>
    tpu.vector_store %arg13[%c96_20, %c0_21], %32 {strides = array<i32>} : memref<144x256xbf16, #tpu.memory_space<vmem>>, vector<16x256xbf16>,
    %c240_i32 = arith.constant 240 : i32
    %34 = tpu.dynamic_rotate %1 by %c240_i32 dim 1 : vector<16x256xf32>, i32 -> vector<16x256xf32>
    %c112 = arith.constant 112 : index
    %c0_22 = arith.constant 0 : index
    %35 = vector.load %arg10[%c112, %c0_22] : memref<144x256xf32, #tpu.memory_space<vmem>>, vector<16x256xf32>
    %36 = arith.mulf %34, %35 : vector<16x256xf32>
    %37 = arith.truncf %36 : vector<16x256xf32> to vector<16x256xbf16>
    %c112_23 = arith.constant 112 : index
    %c0_24 = arith.constant 0 : index
    %38 = vector.load %arg13[%c112_23, %c0_24] : memref<144x256xbf16, #tpu.memory_space<vmem>>, vector<16x256xbf16>
    tpu.vector_store %arg13[%c112_23, %c0_24], %37 {strides = array<i32>} : memref<144x256xbf16, #tpu.memory_space<vmem>>, vector<16x256xbf16>,
    %c239_i32 = arith.constant 239 : i32
    %39 = tpu.dynamic_rotate %1 by %c239_i32 dim 1 : vector<16x256xf32>, i32 -> vector<16x256xf32>
    %c128 = arith.constant 128 : index
    %c0_25 = arith.constant 0 : index
    %40 = vector.load %arg10[%c128, %c0_25] : memref<144x256xf32, #tpu.memory_space<vmem>>, vector<16x256xf32>
    %41 = arith.mulf %39, %40 : vector<16x256xf32>
    %42 = arith.truncf %41 : vector<16x256xf32> to vector<16x256xbf16>
    %c128_26 = arith.constant 128 : index
    %c0_27 = arith.constant 0 : index
    %43 = vector.load %arg13[%c128_26, %c0_27] : memref<144x256xbf16, #tpu.memory_space<vmem>>, vector<16x256xbf16>
    tpu.vector_store %arg13[%c128_26, %c0_27], %42 {strides = array<i32>} : memref<144x256xbf16, #tpu.memory_space<vmem>>, vector<16x256xbf16>,
    %c0_28 = arith.constant 0 : index
    %c0_29 = arith.constant 0 : index
    %44 = vector.load %arg2[%c0_28, %c0_29] : memref<16x144xbf16, #tpu.memory_space<vmem>>, vector<16x144xbf16>
    %c0_30 = arith.constant 0 : index
    %c0_31 = arith.constant 0 : index
    %45 = vector.load %arg13[%c0_30, %c0_31] : memref<144x256xbf16, #tpu.memory_space<vmem>>, vector<144x256xbf16>
    %cst = arith.constant dense<0.000000e+00> : vector<16x256xf32>
    %46 = tpu.matmul %44, %45, %cst {dimension_numbers = #tpu.dot_dimension_numbers<[1], [0], [0], [1], [0, 0, 1, 1], [], []>} : vector<16x144xbf16>, vector<144x256xbf16>, vector<16x256xf32> -> vector<16x256xf32>
    %c0_32 = arith.constant 0 : index
    %c0_33 = arith.constant 0 : index
    %47 = vector.load %arg3[%c0_32, %c0_33] : memref<16x1xf32, #tpu.memory_space<vmem>>, vector<16x1xf32>
    %48 = vector.broadcast %47 : vector<16x1xf32> to vector<16x256xf32>
    %49 = arith.addf %46, %48 : vector<16x256xf32>
    %c17_i32_34 = arith.constant 17 : i32
    %50 = tpu.dynamic_rotate %49 by %c17_i32_34 dim 1 : vector<16x256xf32>, i32 -> vector<16x256xf32>
    %c0_35 = arith.constant 0 : index
    %c0_36 = arith.constant 0 : index
    %51 = vector.load %arg10[%c0_35, %c0_36] : memref<144x256xf32, #tpu.memory_space<vmem>>, vector<16x256xf32>
    %52 = arith.mulf %50, %51 : vector<16x256xf32>
    %53 = arith.truncf %52 : vector<16x256xf32> to vector<16x256xbf16>
    %c0_37 = arith.constant 0 : index
    %c0_38 = arith.constant 0 : index
    %54 = vector.load %arg13[%c0_37, %c0_38] : memref<144x256xbf16, #tpu.memory_space<vmem>>, vector<16x256xbf16>
    tpu.vector_store %arg13[%c0_37, %c0_38], %53 {strides = array<i32>} : memref<144x256xbf16, #tpu.memory_space<vmem>>, vector<16x256xbf16>,
    %c16_i32_39 = arith.constant 16 : i32
    %55 = tpu.dynamic_rotate %49 by %c16_i32_39 dim 1 : vector<16x256xf32>, i32 -> vector<16x256xf32>
    %c16_40 = arith.constant 16 : index
    %c0_41 = arith.constant 0 : index
    %56 = vector.load %arg10[%c16_40, %c0_41] : memref<144x256xf32, #tpu.memory_space<vmem>>, vector<16x256xf32>
    %57 = arith.mulf %55, %56 : vector<16x256xf32>
    %58 = arith.truncf %57 : vector<16x256xf32> to vector<16x256xbf16>
    %c16_42 = arith.constant 16 : index
    %c0_43 = arith.constant 0 : index
    %59 = vector.load %arg13[%c16_42, %c0_43] : memref<144x256xbf16, #tpu.memory_space<vmem>>, vector<16x256xbf16>
    tpu.vector_store %arg13[%c16_42, %c0_43], %58 {strides = array<i32>} : memref<144x256xbf16, #tpu.memory_space<vmem>>, vector<16x256xbf16>,
    %c15_i32_44 = arith.constant 15 : i32
    %60 = tpu.dynamic_rotate %49 by %c15_i32_44 dim 1 : vector<16x256xf32>, i32 -> vector<16x256xf32>
    %c32_45 = arith.constant 32 : index
    %c0_46 = arith.constant 0 : index
    %61 = vector.load %arg10[%c32_45, %c0_46] : memref<144x256xf32, #tpu.memory_space<vmem>>, vector<16x256xf32>
    %62 = arith.mulf %60, %61 : vector<16x256xf32>
    %63 = arith.truncf %62 : vector<16x256xf32> to vector<16x256xbf16>
    %c32_47 = arith.constant 32 : index
    %c0_48 = arith.constant 0 : index
    %64 = vector.load %arg13[%c32_47, %c0_48] : memref<144x256xbf16, #tpu.memory_space<vmem>>, vector<16x256xbf16>
    tpu.vector_store %arg13[%c32_47, %c0_48], %63 {strides = array<i32>} : memref<144x256xbf16, #tpu.memory_space<vmem>>, vector<16x256xbf16>,
    %c1_i32_49 = arith.constant 1 : i32
    %65 = tpu.dynamic_rotate %49 by %c1_i32_49 dim 1 : vector<16x256xf32>, i32 -> vector<16x256xf32>
    %c48_50 = arith.constant 48 : index
    %c0_51 = arith.constant 0 : index
    %66 = vector.load %arg10[%c48_50, %c0_51] : memref<144x256xf32, #tpu.memory_space<vmem>>, vector<16x256xf32>
    %67 = arith.mulf %65, %66 : vector<16x256xf32>
    %68 = arith.truncf %67 : vector<16x256xf32> to vector<16x256xbf16>
    %c48_52 = arith.constant 48 : index
    %c0_53 = arith.constant 0 : index
    %69 = vector.load %arg13[%c48_52, %c0_53] : memref<144x256xbf16, #tpu.memory_space<vmem>>, vector<16x256xbf16>
    tpu.vector_store %arg13[%c48_52, %c0_53], %68 {strides = array<i32>} : memref<144x256xbf16, #tpu.memory_space<vmem>>, vector<16x256xbf16>,
    %70 = arith.truncf %49 : vector<16x256xf32> to vector<16x256xbf16>
    %c64_54 = arith.constant 64 : index
    %c0_55 = arith.constant 0 : index
    %71 = vector.load %arg13[%c64_54, %c0_55] : memref<144x256xbf16, #tpu.memory_space<vmem>>, vector<16x256xbf16>
    tpu.vector_store %arg13[%c64_54, %c0_55], %70 {strides = array<i32>} : memref<144x256xbf16, #tpu.memory_space<vmem>>, vector<16x256xbf16>,
    %c255_i32_56 = arith.constant 255 : i32
    %72 = tpu.dynamic_rotate %49 by %c255_i32_56 dim 1 : vector<16x256xf32>, i32 -> vector<16x256xf32>
    %c80_57 = arith.constant 80 : index
    %c0_58 = arith.constant 0 : index
    %73 = vector.load %arg10[%c80_57, %c0_58] : memref<144x256xf32, #tpu.memory_space<vmem>>, vector<16x256xf32>
    %74 = arith.mulf %72, %73 : vector<16x256xf32>
    %75 = arith.truncf %74 : vector<16x256xf32> to vector<16x256xbf16>
    %c80_59 = arith.constant 80 : index
    %c0_60 = arith.constant 0 : index
    %76 = vector.load %arg13[%c80_59, %c0_60] : memref<144x256xbf16, #tpu.memory_space<vmem>>, vector<16x256xbf16>
    tpu.vector_store %arg13[%c80_59, %c0_60], %75 {strides = array<i32>} : memref<144x256xbf16, #tpu.memory_space<vmem>>, vector<16x256xbf16>,
    %c241_i32_61 = arith.constant 241 : i32
    %77 = tpu.dynamic_rotate %49 by %c241_i32_61 dim 1 : vector<16x256xf32>, i32 -> vector<16x256xf32>
    %c96_62 = arith.constant 96 : index
    %c0_63 = arith.constant 0 : index
    %78 = vector.load %arg10[%c96_62, %c0_63] : memref<144x256xf32, #tpu.memory_space<vmem>>, vector<16x256xf32>
    %79 = arith.mulf %77, %78 : vector<16x256xf32>
    %80 = arith.truncf %79 : vector<16x256xf32> to vector<16x256xbf16>
    %c96_64 = arith.constant 96 : index
    %c0_65 = arith.constant 0 : index
    %81 = vector.load %arg13[%c96_64, %c0_65] : memref<144x256xbf16, #tpu.memory_space<vmem>>, vector<16x256xbf16>
    tpu.vector_store %arg13[%c96_64, %c0_65], %80 {strides = array<i32>} : memref<144x256xbf16, #tpu.memory_space<vmem>>, vector<16x256xbf16>,
    %c240_i32_66 = arith.constant 240 : i32
    %82 = tpu.dynamic_rotate %49 by %c240_i32_66 dim 1 : vector<16x256xf32>, i32 -> vector<16x256xf32>
    %c112_67 = arith.constant 112 : index
    %c0_68 = arith.constant 0 : index
    %83 = vector.load %arg10[%c112_67, %c0_68] : memref<144x256xf32, #tpu.memory_space<vmem>>, vector<16x256xf32>
    %84 = arith.mulf %82, %83 : vector<16x256xf32>
    %85 = arith.truncf %84 : vector<16x256xf32> to vector<16x256xbf16>
    %c112_69 = arith.constant 112 : index
    %c0_70 = arith.constant 0 : index
    %86 = vector.load %arg13[%c112_69, %c0_70] : memref<144x256xbf16, #tpu.memory_space<vmem>>, vector<16x256xbf16>
    tpu.vector_store %arg13[%c112_69, %c0_70], %85 {strides = array<i32>} : memref<144x256xbf16, #tpu.memory_space<vmem>>, vector<16x256xbf16>,
    %c239_i32_71 = arith.constant 239 : i32
    %87 = tpu.dynamic_rotate %49 by %c239_i32_71 dim 1 : vector<16x256xf32>, i32 -> vector<16x256xf32>
    %c128_72 = arith.constant 128 : index
    %c0_73 = arith.constant 0 : index
    %88 = vector.load %arg10[%c128_72, %c0_73] : memref<144x256xf32, #tpu.memory_space<vmem>>, vector<16x256xf32>
    %89 = arith.mulf %87, %88 : vector<16x256xf32>
    %90 = arith.truncf %89 : vector<16x256xf32> to vector<16x256xbf16>
    %c128_74 = arith.constant 128 : index
    %c0_75 = arith.constant 0 : index
    %91 = vector.load %arg13[%c128_74, %c0_75] : memref<144x256xbf16, #tpu.memory_space<vmem>>, vector<16x256xbf16>
    tpu.vector_store %arg13[%c128_74, %c0_75], %90 {strides = array<i32>} : memref<144x256xbf16, #tpu.memory_space<vmem>>, vector<16x256xbf16>,
    %c0_76 = arith.constant 0 : index
    %c0_77 = arith.constant 0 : index
    %92 = vector.load %arg4[%c0_76, %c0_77] : memref<16x144xbf16, #tpu.memory_space<vmem>>, vector<16x144xbf16>
    %c0_78 = arith.constant 0 : index
    %c0_79 = arith.constant 0 : index
    %93 = vector.load %arg13[%c0_78, %c0_79] : memref<144x256xbf16, #tpu.memory_space<vmem>>, vector<144x256xbf16>
    %cst_80 = arith.constant dense<0.000000e+00> : vector<16x256xf32>
    %94 = tpu.matmul %92, %93, %cst_80 {dimension_numbers = #tpu.dot_dimension_numbers<[1], [0], [0], [1], [0, 0, 1, 1], [], []>} : vector<16x144xbf16>, vector<144x256xbf16>, vector<16x256xf32> -> vector<16x256xf32>
    %c0_81 = arith.constant 0 : index
    %c0_82 = arith.constant 0 : index
    %95 = vector.load %arg5[%c0_81, %c0_82] : memref<16x1xf32, #tpu.memory_space<vmem>>, vector<16x1xf32>
    %96 = vector.broadcast %95 : vector<16x1xf32> to vector<16x256xf32>
    %97 = arith.addf %94, %96 : vector<16x256xf32>
    %c17_i32_83 = arith.constant 17 : i32
    %98 = tpu.dynamic_rotate %97 by %c17_i32_83 dim 1 : vector<16x256xf32>, i32 -> vector<16x256xf32>
    %c0_84 = arith.constant 0 : index
    %c0_85 = arith.constant 0 : index
    %99 = vector.load %arg10[%c0_84, %c0_85] : memref<144x256xf32, #tpu.memory_space<vmem>>, vector<16x256xf32>
    %100 = arith.mulf %98, %99 : vector<16x256xf32>
    %101 = arith.truncf %100 : vector<16x256xf32> to vector<16x256xbf16>
    %c0_86 = arith.constant 0 : index
    %c0_87 = arith.constant 0 : index
    %102 = vector.load %arg13[%c0_86, %c0_87] : memref<144x256xbf16, #tpu.memory_space<vmem>>, vector<16x256xbf16>
    tpu.vector_store %arg13[%c0_86, %c0_87], %101 {strides = array<i32>} : memref<144x256xbf16, #tpu.memory_space<vmem>>, vector<16x256xbf16>,
    %c16_i32_88 = arith.constant 16 : i32
    %103 = tpu.dynamic_rotate %97 by %c16_i32_88 dim 1 : vector<16x256xf32>, i32 -> vector<16x256xf32>
    %c16_89 = arith.constant 16 : index
    %c0_90 = arith.constant 0 : index
    %104 = vector.load %arg10[%c16_89, %c0_90] : memref<144x256xf32, #tpu.memory_space<vmem>>, vector<16x256xf32>
    %105 = arith.mulf %103, %104 : vector<16x256xf32>
    %106 = arith.truncf %105 : vector<16x256xf32> to vector<16x256xbf16>
    %c16_91 = arith.constant 16 : index
    %c0_92 = arith.constant 0 : index
    %107 = vector.load %arg13[%c16_91, %c0_92] : memref<144x256xbf16, #tpu.memory_space<vmem>>, vector<16x256xbf16>
    tpu.vector_store %arg13[%c16_91, %c0_92], %106 {strides = array<i32>} : memref<144x256xbf16, #tpu.memory_space<vmem>>, vector<16x256xbf16>,
    %c15_i32_93 = arith.constant 15 : i32
    %108 = tpu.dynamic_rotate %97 by %c15_i32_93 dim 1 : vector<16x256xf32>, i32 -> vector<16x256xf32>
    %c32_94 = arith.constant 32 : index
    %c0_95 = arith.constant 0 : index
    %109 = vector.load %arg10[%c32_94, %c0_95] : memref<144x256xf32, #tpu.memory_space<vmem>>, vector<16x256xf32>
    %110 = arith.mulf %108, %109 : vector<16x256xf32>
    %111 = arith.truncf %110 : vector<16x256xf32> to vector<16x256xbf16>
    %c32_96 = arith.constant 32 : index
    %c0_97 = arith.constant 0 : index
    %112 = vector.load %arg13[%c32_96, %c0_97] : memref<144x256xbf16, #tpu.memory_space<vmem>>, vector<16x256xbf16>
    tpu.vector_store %arg13[%c32_96, %c0_97], %111 {strides = array<i32>} : memref<144x256xbf16, #tpu.memory_space<vmem>>, vector<16x256xbf16>,
    %c1_i32_98 = arith.constant 1 : i32
    %113 = tpu.dynamic_rotate %97 by %c1_i32_98 dim 1 : vector<16x256xf32>, i32 -> vector<16x256xf32>
    %c48_99 = arith.constant 48 : index
    %c0_100 = arith.constant 0 : index
    %114 = vector.load %arg10[%c48_99, %c0_100] : memref<144x256xf32, #tpu.memory_space<vmem>>, vector<16x256xf32>
    %115 = arith.mulf %113, %114 : vector<16x256xf32>
    %116 = arith.truncf %115 : vector<16x256xf32> to vector<16x256xbf16>
    %c48_101 = arith.constant 48 : index
    %c0_102 = arith.constant 0 : index
    %117 = vector.load %arg13[%c48_101, %c0_102] : memref<144x256xbf16, #tpu.memory_space<vmem>>, vector<16x256xbf16>
    tpu.vector_store %arg13[%c48_101, %c0_102], %116 {strides = array<i32>} : memref<144x256xbf16, #tpu.memory_space<vmem>>, vector<16x256xbf16>,
    %118 = arith.truncf %97 : vector<16x256xf32> to vector<16x256xbf16>
    %c64_103 = arith.constant 64 : index
    %c0_104 = arith.constant 0 : index
    %119 = vector.load %arg13[%c64_103, %c0_104] : memref<144x256xbf16, #tpu.memory_space<vmem>>, vector<16x256xbf16>
    tpu.vector_store %arg13[%c64_103, %c0_104], %118 {strides = array<i32>} : memref<144x256xbf16, #tpu.memory_space<vmem>>, vector<16x256xbf16>,
    %c255_i32_105 = arith.constant 255 : i32
    %120 = tpu.dynamic_rotate %97 by %c255_i32_105 dim 1 : vector<16x256xf32>, i32 -> vector<16x256xf32>
    %c80_106 = arith.constant 80 : index
    %c0_107 = arith.constant 0 : index
    %121 = vector.load %arg10[%c80_106, %c0_107] : memref<144x256xf32, #tpu.memory_space<vmem>>, vector<16x256xf32>
    %122 = arith.mulf %120, %121 : vector<16x256xf32>
    %123 = arith.truncf %122 : vector<16x256xf32> to vector<16x256xbf16>
    %c80_108 = arith.constant 80 : index
    %c0_109 = arith.constant 0 : index
    %124 = vector.load %arg13[%c80_108, %c0_109] : memref<144x256xbf16, #tpu.memory_space<vmem>>, vector<16x256xbf16>
    tpu.vector_store %arg13[%c80_108, %c0_109], %123 {strides = array<i32>} : memref<144x256xbf16, #tpu.memory_space<vmem>>, vector<16x256xbf16>,
    %c241_i32_110 = arith.constant 241 : i32
    %125 = tpu.dynamic_rotate %97 by %c241_i32_110 dim 1 : vector<16x256xf32>, i32 -> vector<16x256xf32>
    %c96_111 = arith.constant 96 : index
    %c0_112 = arith.constant 0 : index
    %126 = vector.load %arg10[%c96_111, %c0_112] : memref<144x256xf32, #tpu.memory_space<vmem>>, vector<16x256xf32>
    %127 = arith.mulf %125, %126 : vector<16x256xf32>
    %128 = arith.truncf %127 : vector<16x256xf32> to vector<16x256xbf16>
    %c96_113 = arith.constant 96 : index
    %c0_114 = arith.constant 0 : index
    %129 = vector.load %arg13[%c96_113, %c0_114] : memref<144x256xbf16, #tpu.memory_space<vmem>>, vector<16x256xbf16>
    tpu.vector_store %arg13[%c96_113, %c0_114], %128 {strides = array<i32>} : memref<144x256xbf16, #tpu.memory_space<vmem>>, vector<16x256xbf16>,
    %c240_i32_115 = arith.constant 240 : i32
    %130 = tpu.dynamic_rotate %97 by %c240_i32_115 dim 1 : vector<16x256xf32>, i32 -> vector<16x256xf32>
    %c112_116 = arith.constant 112 : index
    %c0_117 = arith.constant 0 : index
    %131 = vector.load %arg10[%c112_116, %c0_117] : memref<144x256xf32, #tpu.memory_space<vmem>>, vector<16x256xf32>
    %132 = arith.mulf %130, %131 : vector<16x256xf32>
    %133 = arith.truncf %132 : vector<16x256xf32> to vector<16x256xbf16>
    %c112_118 = arith.constant 112 : index
    %c0_119 = arith.constant 0 : index
    %134 = vector.load %arg13[%c112_118, %c0_119] : memref<144x256xbf16, #tpu.memory_space<vmem>>, vector<16x256xbf16>
    tpu.vector_store %arg13[%c112_118, %c0_119], %133 {strides = array<i32>} : memref<144x256xbf16, #tpu.memory_space<vmem>>, vector<16x256xbf16>,
    %c239_i32_120 = arith.constant 239 : i32
    %135 = tpu.dynamic_rotate %97 by %c239_i32_120 dim 1 : vector<16x256xf32>, i32 -> vector<16x256xf32>
    %c128_121 = arith.constant 128 : index
    %c0_122 = arith.constant 0 : index
    %136 = vector.load %arg10[%c128_121, %c0_122] : memref<144x256xf32, #tpu.memory_space<vmem>>, vector<16x256xf32>
    %137 = arith.mulf %135, %136 : vector<16x256xf32>
    %138 = arith.truncf %137 : vector<16x256xf32> to vector<16x256xbf16>
    %c128_123 = arith.constant 128 : index
    %c0_124 = arith.constant 0 : index
    %139 = vector.load %arg13[%c128_123, %c0_124] : memref<144x256xbf16, #tpu.memory_space<vmem>>, vector<16x256xbf16>
    tpu.vector_store %arg13[%c128_123, %c0_124], %138 {strides = array<i32>} : memref<144x256xbf16, #tpu.memory_space<vmem>>, vector<16x256xbf16>,
    %c0_125 = arith.constant 0 : index
    %c0_126 = arith.constant 0 : index
    %140 = vector.load %arg6[%c0_125, %c0_126] : memref<16x144xbf16, #tpu.memory_space<vmem>>, vector<16x144xbf16>
    %c0_127 = arith.constant 0 : index
    %c0_128 = arith.constant 0 : index
    %141 = vector.load %arg13[%c0_127, %c0_128] : memref<144x256xbf16, #tpu.memory_space<vmem>>, vector<144x256xbf16>
    %cst_129 = arith.constant dense<0.000000e+00> : vector<16x256xf32>
    %142 = tpu.matmul %140, %141, %cst_129 {dimension_numbers = #tpu.dot_dimension_numbers<[1], [0], [0], [1], [0, 0, 1, 1], [], []>} : vector<16x144xbf16>, vector<144x256xbf16>, vector<16x256xf32> -> vector<16x256xf32>
    %c0_130 = arith.constant 0 : index
    %c0_131 = arith.constant 0 : index
    %143 = vector.load %arg7[%c0_130, %c0_131] : memref<16x1xf32, #tpu.memory_space<vmem>>, vector<16x1xf32>
    %144 = vector.broadcast %143 : vector<16x1xf32> to vector<16x256xf32>
    %145 = arith.addf %142, %144 : vector<16x256xf32>
    %c17_i32_132 = arith.constant 17 : i32
    %146 = tpu.dynamic_rotate %145 by %c17_i32_132 dim 1 : vector<16x256xf32>, i32 -> vector<16x256xf32>
    %c0_133 = arith.constant 0 : index
    %c0_134 = arith.constant 0 : index
    %147 = vector.load %arg10[%c0_133, %c0_134] : memref<144x256xf32, #tpu.memory_space<vmem>>, vector<16x256xf32>
    %148 = arith.mulf %146, %147 : vector<16x256xf32>
    %149 = arith.truncf %148 : vector<16x256xf32> to vector<16x256xbf16>
    %c0_135 = arith.constant 0 : index
    %c0_136 = arith.constant 0 : index
    %150 = vector.load %arg13[%c0_135, %c0_136] : memref<144x256xbf16, #tpu.memory_space<vmem>>, vector<16x256xbf16>
    tpu.vector_store %arg13[%c0_135, %c0_136], %149 {strides = array<i32>} : memref<144x256xbf16, #tpu.memory_space<vmem>>, vector<16x256xbf16>,
    %c16_i32_137 = arith.constant 16 : i32
    %151 = tpu.dynamic_rotate %145 by %c16_i32_137 dim 1 : vector<16x256xf32>, i32 -> vector<16x256xf32>
    %c16_138 = arith.constant 16 : index
    %c0_139 = arith.constant 0 : index
    %152 = vector.load %arg10[%c16_138, %c0_139] : memref<144x256xf32, #tpu.memory_space<vmem>>, vector<16x256xf32>
    %153 = arith.mulf %151, %152 : vector<16x256xf32>
    %154 = arith.truncf %153 : vector<16x256xf32> to vector<16x256xbf16>
    %c16_140 = arith.constant 16 : index
    %c0_141 = arith.constant 0 : index
    %155 = vector.load %arg13[%c16_140, %c0_141] : memref<144x256xbf16, #tpu.memory_space<vmem>>, vector<16x256xbf16>
    tpu.vector_store %arg13[%c16_140, %c0_141], %154 {strides = array<i32>} : memref<144x256xbf16, #tpu.memory_space<vmem>>, vector<16x256xbf16>,
    %c15_i32_142 = arith.constant 15 : i32
    %156 = tpu.dynamic_rotate %145 by %c15_i32_142 dim 1 : vector<16x256xf32>, i32 -> vector<16x256xf32>
    %c32_143 = arith.constant 32 : index
    %c0_144 = arith.constant 0 : index
    %157 = vector.load %arg10[%c32_143, %c0_144] : memref<144x256xf32, #tpu.memory_space<vmem>>, vector<16x256xf32>
    %158 = arith.mulf %156, %157 : vector<16x256xf32>
    %159 = arith.truncf %158 : vector<16x256xf32> to vector<16x256xbf16>
    %c32_145 = arith.constant 32 : index
    %c0_146 = arith.constant 0 : index
    %160 = vector.load %arg13[%c32_145, %c0_146] : memref<144x256xbf16, #tpu.memory_space<vmem>>, vector<16x256xbf16>
    tpu.vector_store %arg13[%c32_145, %c0_146], %159 {strides = array<i32>} : memref<144x256xbf16, #tpu.memory_space<vmem>>, vector<16x256xbf16>,
    %c1_i32_147 = arith.constant 1 : i32
    %161 = tpu.dynamic_rotate %145 by %c1_i32_147 dim 1 : vector<16x256xf32>, i32 -> vector<16x256xf32>
    %c48_148 = arith.constant 48 : index
    %c0_149 = arith.constant 0 : index
    %162 = vector.load %arg10[%c48_148, %c0_149] : memref<144x256xf32, #tpu.memory_space<vmem>>, vector<16x256xf32>
    %163 = arith.mulf %161, %162 : vector<16x256xf32>
    %164 = arith.truncf %163 : vector<16x256xf32> to vector<16x256xbf16>
    %c48_150 = arith.constant 48 : index
    %c0_151 = arith.constant 0 : index
    %165 = vector.load %arg13[%c48_150, %c0_151] : memref<144x256xbf16, #tpu.memory_space<vmem>>, vector<16x256xbf16>
    tpu.vector_store %arg13[%c48_150, %c0_151], %164 {strides = array<i32>} : memref<144x256xbf16, #tpu.memory_space<vmem>>, vector<16x256xbf16>,
    %166 = arith.truncf %145 : vector<16x256xf32> to vector<16x256xbf16>
    %c64_152 = arith.constant 64 : index
    %c0_153 = arith.constant 0 : index
    %167 = vector.load %arg13[%c64_152, %c0_153] : memref<144x256xbf16, #tpu.memory_space<vmem>>, vector<16x256xbf16>
    tpu.vector_store %arg13[%c64_152, %c0_153], %166 {strides = array<i32>} : memref<144x256xbf16, #tpu.memory_space<vmem>>, vector<16x256xbf16>,
    %c255_i32_154 = arith.constant 255 : i32
    %168 = tpu.dynamic_rotate %145 by %c255_i32_154 dim 1 : vector<16x256xf32>, i32 -> vector<16x256xf32>
    %c80_155 = arith.constant 80 : index
    %c0_156 = arith.constant 0 : index
    %169 = vector.load %arg10[%c80_155, %c0_156] : memref<144x256xf32, #tpu.memory_space<vmem>>, vector<16x256xf32>
    %170 = arith.mulf %168, %169 : vector<16x256xf32>
    %171 = arith.truncf %170 : vector<16x256xf32> to vector<16x256xbf16>
    %c80_157 = arith.constant 80 : index
    %c0_158 = arith.constant 0 : index
    %172 = vector.load %arg13[%c80_157, %c0_158] : memref<144x256xbf16, #tpu.memory_space<vmem>>, vector<16x256xbf16>
    tpu.vector_store %arg13[%c80_157, %c0_158], %171 {strides = array<i32>} : memref<144x256xbf16, #tpu.memory_space<vmem>>, vector<16x256xbf16>,
    %c241_i32_159 = arith.constant 241 : i32
    %173 = tpu.dynamic_rotate %145 by %c241_i32_159 dim 1 : vector<16x256xf32>, i32 -> vector<16x256xf32>
    %c96_160 = arith.constant 96 : index
    %c0_161 = arith.constant 0 : index
    %174 = vector.load %arg10[%c96_160, %c0_161] : memref<144x256xf32, #tpu.memory_space<vmem>>, vector<16x256xf32>
    %175 = arith.mulf %173, %174 : vector<16x256xf32>
    %176 = arith.truncf %175 : vector<16x256xf32> to vector<16x256xbf16>
    %c96_162 = arith.constant 96 : index
    %c0_163 = arith.constant 0 : index
    %177 = vector.load %arg13[%c96_162, %c0_163] : memref<144x256xbf16, #tpu.memory_space<vmem>>, vector<16x256xbf16>
    tpu.vector_store %arg13[%c96_162, %c0_163], %176 {strides = array<i32>} : memref<144x256xbf16, #tpu.memory_space<vmem>>, vector<16x256xbf16>,
    %c240_i32_164 = arith.constant 240 : i32
    %178 = tpu.dynamic_rotate %145 by %c240_i32_164 dim 1 : vector<16x256xf32>, i32 -> vector<16x256xf32>
    %c112_165 = arith.constant 112 : index
    %c0_166 = arith.constant 0 : index
    %179 = vector.load %arg10[%c112_165, %c0_166] : memref<144x256xf32, #tpu.memory_space<vmem>>, vector<16x256xf32>
    %180 = arith.mulf %178, %179 : vector<16x256xf32>
    %181 = arith.truncf %180 : vector<16x256xf32> to vector<16x256xbf16>
    %c112_167 = arith.constant 112 : index
    %c0_168 = arith.constant 0 : index
    %182 = vector.load %arg13[%c112_167, %c0_168] : memref<144x256xbf16, #tpu.memory_space<vmem>>, vector<16x256xbf16>
    tpu.vector_store %arg13[%c112_167, %c0_168], %181 {strides = array<i32>} : memref<144x256xbf16, #tpu.memory_space<vmem>>, vector<16x256xbf16>,
    %c239_i32_169 = arith.constant 239 : i32
    %183 = tpu.dynamic_rotate %145 by %c239_i32_169 dim 1 : vector<16x256xf32>, i32 -> vector<16x256xf32>
    %c128_170 = arith.constant 128 : index
    %c0_171 = arith.constant 0 : index
    %184 = vector.load %arg10[%c128_170, %c0_171] : memref<144x256xf32, #tpu.memory_space<vmem>>, vector<16x256xf32>
    %185 = arith.mulf %183, %184 : vector<16x256xf32>
    %186 = arith.truncf %185 : vector<16x256xf32> to vector<16x256xbf16>
    %c128_172 = arith.constant 128 : index
    %c0_173 = arith.constant 0 : index
    %187 = vector.load %arg13[%c128_172, %c0_173] : memref<144x256xbf16, #tpu.memory_space<vmem>>, vector<16x256xbf16>
    tpu.vector_store %arg13[%c128_172, %c0_173], %186 {strides = array<i32>} : memref<144x256xbf16, #tpu.memory_space<vmem>>, vector<16x256xbf16>,
    %c0_174 = arith.constant 0 : index
    %c0_175 = arith.constant 0 : index
    %188 = vector.load %arg8[%c0_174, %c0_175] : memref<16x144xbf16, #tpu.memory_space<vmem>>, vector<16x144xbf16>
    %c0_176 = arith.constant 0 : index
    %c0_177 = arith.constant 0 : index
    %189 = vector.load %arg13[%c0_176, %c0_177] : memref<144x256xbf16, #tpu.memory_space<vmem>>, vector<144x256xbf16>
    %cst_178 = arith.constant dense<0.000000e+00> : vector<16x256xf32>
    %190 = tpu.matmul %188, %189, %cst_178 {dimension_numbers = #tpu.dot_dimension_numbers<[1], [0], [0], [1], [0, 0, 1, 1], [], []>} : vector<16x144xbf16>, vector<144x256xbf16>, vector<16x256xf32> -> vector<16x256xf32>
    %c0_179 = arith.constant 0 : index
    %c0_180 = arith.constant 0 : index
    %191 = vector.load %arg9[%c0_179, %c0_180] : memref<16x1xf32, #tpu.memory_space<vmem>>, vector<16x1xf32>
    %192 = vector.broadcast %191 : vector<16x1xf32> to vector<16x256xf32>
    %193 = arith.addf %190, %192 : vector<16x256xf32>
    %c255_i32_181 = arith.constant 255 : i32
    %194 = tpu.dynamic_rotate %193 by %c255_i32_181 dim 1 : vector<16x256xf32>, i32 -> vector<16x256xf32>
    %195 = arith.maximumf %193, %194 : vector<16x256xf32>
    %c240_i32_182 = arith.constant 240 : i32
    %196 = tpu.dynamic_rotate %193 by %c240_i32_182 dim 1 : vector<16x256xf32>, i32 -> vector<16x256xf32>
    %197 = arith.maximumf %195, %196 : vector<16x256xf32>
    %c239_i32_183 = arith.constant 239 : i32
    %198 = tpu.dynamic_rotate %193 by %c239_i32_183 dim 1 : vector<16x256xf32>, i32 -> vector<16x256xf32>
    %199 = arith.maximumf %197, %198 : vector<16x256xf32>
    %cst_184 = arith.constant 0.000000e+00 : f32
    %200 = vector.broadcast %cst_184 : f32 to vector<16x256xf32>
    %201 = arith.maximumf %199, %200 : vector<16x256xf32>
    %c0_185 = arith.constant 0 : index
    %c0_186 = arith.constant 0 : index
    %202 = vector.load %arg11[%c0_185, %c0_186] : memref<256x128xf32, #tpu.memory_space<vmem>>, vector<256x128xf32>
    %cst_187 = arith.constant dense<0.000000e+00> : vector<16x128xf32>
    %203 = tpu.matmul %201, %202, %cst_187 {dimension_numbers = #tpu.dot_dimension_numbers<[1], [0], [0], [1], [0, 0, 1, 1], [], []>} : vector<16x256xf32>, vector<256x128xf32>, vector<16x128xf32> -> vector<16x128xf32>
    %c0_188 = arith.constant 0 : index
    %c0_189 = arith.constant 0 : index
    %c0_190 = arith.constant 0 : index
    %204 = vector.load %arg12[%c0_188, %c0_189, %c0_190] : memref<1x16x128xf32, #tpu.memory_space<vmem>>, vector<1x16x128xf32>
    %205 = vector.shape_cast %204 : vector<1x16x128xf32> to vector<16x128xf32>
    %206 = vector.shape_cast %203 : vector<16x128xf32> to vector<1x16x128xf32>
    tpu.vector_store %arg12[%c0_188, %c0_189, %c0_190], %206 {strides = array<i32>} : memref<1x16x128xf32, #tpu.memory_space<vmem>>, vector<1x16x128xf32>,
    return
  }
  func.func @transform_0(%arg0: i32) -> (i32, i32, i32) {
    %c0_i32 = arith.constant 0 : i32
    %c0_i32_0 = arith.constant 0 : i32
    %c0_i32_1 = arith.constant 0 : i32
    return %arg0, %c0_i32, %c0_i32_0 : i32, i32, i32
  }
  func.func @transform_1(%arg0: i32) -> (i32, i32) {
    %c0_i32 = arith.constant 0 : i32
    %c0_i32_0 = arith.constant 0 : i32
    %c0_i32_1 = arith.constant 0 : i32
    return %c0_i32, %c0_i32_0 : i32, i32
  }
  func.func @transform_2(%arg0: i32) -> (i32, i32) {
    %c0_i32 = arith.constant 0 : i32
    %c0_i32_0 = arith.constant 0 : i32
    %c0_i32_1 = arith.constant 0 : i32
    return %c0_i32, %c0_i32_0 : i32, i32
  }
  func.func @transform_3(%arg0: i32) -> (i32, i32) {
    %c0_i32 = arith.constant 0 : i32
    %c0_i32_0 = arith.constant 0 : i32
    %c0_i32_1 = arith.constant 0 : i32
    return %c0_i32, %c0_i32_0 : i32, i32
  }
  func.func @transform_4(%arg0: i32) -> (i32, i32) {
    %c0_i32 = arith.constant 0 : i32
    %c0_i32_0 = arith.constant 0 : i32
    %c0_i32_1 = arith.constant 0 : i32
    return %c0_i32, %c0_i32_0 : i32, i32
  }
  func.func @transform_5(%arg0: i32) -> (i32, i32) {
    %c0_i32 = arith.constant 0 : i32
    %c0_i32_0 = arith.constant 0 : i32
    %c0_i32_1 = arith.constant 0 : i32
    return %c0_i32, %c0_i32_0 : i32, i32
  }
  func.func @transform_6(%arg0: i32) -> (i32, i32) {
    %c0_i32 = arith.constant 0 : i32
    %c0_i32_0 = arith.constant 0 : i32
    %c0_i32_1 = arith.constant 0 : i32
    return %c0_i32, %c0_i32_0 : i32, i32
  }
  func.func @transform_7(%arg0: i32) -> (i32, i32) {
    %c0_i32 = arith.constant 0 : i32
    %c0_i32_0 = arith.constant 0 : i32
    %c0_i32_1 = arith.constant 0 : i32
    return %c0_i32, %c0_i32_0 : i32, i32
  }
  func.func @transform_8(%arg0: i32) -> (i32, i32) {
    %c0_i32 = arith.constant 0 : i32
    %c0_i32_0 = arith.constant 0 : i32
    %c0_i32_1 = arith.constant 0 : i32
    return %c0_i32, %c0_i32_0 : i32, i32
  }
  func.func @transform_9(%arg0: i32) -> (i32, i32) {
    %c0_i32 = arith.constant 0 : i32
    %c0_i32_0 = arith.constant 0 : i32
    %c0_i32_1 = arith.constant 0 : i32
    return %c0_i32, %c0_i32_0 : i32, i32
  }
  func.func @transform_10(%arg0: i32) -> (i32, i32) {
    %c0_i32 = arith.constant 0 : i32
    %c0_i32_0 = arith.constant 0 : i32
    %c0_i32_1 = arith.constant 0 : i32
    return %c0_i32, %c0_i32_0 : i32, i32
  }
  func.func @transform_11(%arg0: i32) -> (i32, i32, i32) {
    %c0_i32 = arith.constant 0 : i32
    %c0_i32_0 = arith.constant 0 : i32
    %c0_i32_1 = arith.constant 0 : i32
    return %arg0, %c0_i32, %c0_i32_0 : i32, i32, i32
  }
}

</mosaic_0001>

<bundles_post_ra>
// kernel: vggnet4_forward.1
= control target key start
LH: loop header
LB: loop body
LE: loop exit
PB: predicated region body
PF: predicated region fallthrough
CT: control target
= control target key end

     0   :  { %s2000_s17 = smov 0   ;;  %s3229_s0 = inlined_call_operand.vmem [shape: f32[2,16,256], index: 0, kind: input, shape index: {}]   ;;  %s3230_s1 = inlined_call_operand.vmem [shape: bf16[16,144], index: 1, kind: input, shape index: {}]   ;;  %s3231_s2 = inlined_call_operand.vmem [shape: f32[16,1], index: 2, kind: input, shape index: {}]   ;;  %s3232_s3 = inlined_call_operand.vmem [shape: bf16[16,144], index: 3, kind: input, shape index: {}]   ;;  %s3233_s4 = inlined_call_operand.vmem [shape: f32[16,1], index: 4, kind: input, shape index: {}]   ;;  %s3234_s5 = inlined_call_operand.vmem [shape: bf16[16,144], index: 5, kind: input, shape index: {}]   ;;  %s3235_s6 = inlined_call_operand.vmem [shape: f32[16,1], index: 6, kind: input, shape index: {}]   ;;  %s3236_s7 = inlined_call_operand.vmem [shape: bf16[16,144], index: 7, kind: input, shape index: {}]   ;;  %s3237_s8 = inlined_call_operand.vmem [shape: f32[16,1], index: 8, kind: input, shape index: {}]   ;;  %s3238_s9 = inlined_call_operand.vmem [shape: f32[144,256], index: 9, kind: input, shape index: {}]   ;;  %s3239_s10 = inlined_call_operand.vmem [shape: f32[256,128], index: 10, kind: input, shape index: {}]   ;;  %s3240_s11 = inlined_call_operand.vmem [shape: f32[2,16,128], index: 11, kind: output, shape index: {}]  }
   0x1 LB: > { %s1751_s18 = sadd.s32 4294967295, %s1929_s17   ;;  %p1755_p0 = scmp.ge.s32.totalorder %s1929_s17, 1  ;;  %s1929_s17 = sphi %s2000_s17, %s21_s17  }
   0x2   : > { %p337_p1 = scmp.lt.s32.totalorder %s1929_s17, 3 }
   0x4   : > { %p338_p2 = pnand %p1755_p0, %p337_p1 }
   0x6   : > { %341 = sbr.rel (%p338_p2) target bundleno = 1969 (0x7b1), region = 64 }
   0xd   : > { %p377_p3 = scmp.lt.s32.totalorder %s1751_s18, 1  ;;  %s1931_s23 = smov 17   ;;  %v1913_v6 = vld [vmem:[%s3230_s1 + $0x4] ss:$8 sps:$4 sm:$0xff]   ;;  %vm639_vm0 = vcmask 130048   ;;  %v1939_v7 = vmov 0   ;;  %v400_v10 = vlaneseq }
   0xe   : > { %s1932_s24 = smov 16   ;;  %s1933_s25 = smov 15   ;;  %1762 = vmatprep.mubr.msk.bf16.mxu0 %vm639_vm0, %v1913_v6  ;;  %1879 = vset.pattern.permute.xlu0 %v1939_v7  ;;  %v618_v8 = vld [vmem:[%s3231_s2] sm:$0xff]  ;;  %v619_v9 = vld [vmem:[%s3231_s2 + $0x8] sm:$0xff]  ;;  %v2115_v17 = vld [vmem:[%s3238_s9 + $0x18] sm:$0xff] }
   0xf   : > { %s3254_s18 = smov (!%p377_p3, %s1751_s18), 1  ;;  %s1934_s26 = smov 1   ;;  %1880 = vset.pattern.permute.xlu1 %v1939_v7  ;;  %v2100_v11 = vand.u32 127, %v400_v10  ;;  %v2106_v14 = vld [vmem:[%s3238_s9 + $0x8] sm:$0xff]  ;;  %3244 = vst [vmem:[#allocation3_spill] sm:$0xff] %v2115_v17  ;;  %v2120_v18 = vld [vmem:[%s3238_s9] sm:$0xff] }
  0x10   : > { %s1774_s19 = sshll.u32 %s3254_s18, 5  ;;  %s1935_s27 = smov 127   ;;  %v2125_v19 = vld [vmem:[%s3238_s9 + $0x10] sm:$0xff]  ;;  %v2144_v33 = vld [vmem:[%s3238_s9 + $0x38] sm:$0xff]  ;;  %v2149_v34 = vld [vmem:[%s3238_s9 + $0x20] sm:$0xff] }
  0x11   : > { %s381_s22 = scalar_lea.vmem %s3229_s0, %s1774_s19  ;;  %s1936_s28 = smov 113   ;;  %vm402_vm1 = vcmp.lt.s32.totalorder %v2100_v11, 17  ;;  %vm427_vm2 = vcmp.lt.s32.totalorder %v2100_v11, 16  ;;  %v2139_v32 = vld [vmem:[%s3238_s9 + $0x30] sm:$0xff]  ;;  %v2154_v35 = vld [vmem:[%s3238_s9 + $0x28] sm:$0xff]  ;;  %vm452_vm3 = vcmp.lt.s32.totalorder %v2100_v11, 15 }
  0x12   : > { %v2014_v0 = vld [vmem:[%s381_s22 + $0x8] sm:$0xff]  ;;  %v2016_v1 = vld [vmem:[%s381_s22] sm:$0xff]  ;;  %v2022_v2 = vld [vmem:[%s381_s22 + $0x18] sm:$0xff]  ;;  %s1937_s29 = smov 112   ;;  %s1938_s13 = smov 111   ;;  %vm477_vm4 = vcmp.lt.s32.totalorder %v2100_v11, 1 }
  0x13   : > { %396 = vrot.lane.b32.xlu1 %v2014_v0, %s1931_s23  ;;  %392 = vrot.lane.b32.xlu0 %v2016_v1, %s1931_s23  ;;  %v2024_v3 = vld [vmem:[%s381_s22 + $0x10] sm:$0xff]  ;;  %v495_v4 = vpack.c.bf16 %v2022_v2, %v2014_v0  ;;  %v2177_v51 = vld [vmem:[%s3238_s9 + $0x58] sm:$0xff]  ;;  %vm506_vm5 = vcmp.lt.s32.totalorder %v2100_v11, 127  ;;  %vm531_vm6 = vcmp.lt.s32.totalorder %v2100_v11, 113  ;;  %vm556_vm7 = vcmp.lt.s32.totalorder %v2100_v11, 112 }
  0x14   : > { %v494_v5 = vpack.c.bf16 %v2024_v3, %v2016_v1  ;;  %v2172_v50 = vld [vmem:[%s3238_s9 + $0x50] sm:$0xff]  ;;  %v2182_v52 = vld [vmem:[%s3238_s9 + $0x40] sm:$0xff]  ;;  %v2187_v53 = vld [vmem:[%s3238_s9 + $0x48] sm:$0xff]  ;;  %vm581_vm8 = vcmp.lt.s32.totalorder %v2100_v11, 111 }
  0x15   : > { %v2205_v10 = vld [vmem:[%s3238_s9 + $0x70] sm:$0xff] }
  0x17   : > { %398 = vrot.lane.b32.xlu1 %v2022_v2, %s1931_s23  ;;  %394 = vrot.lane.b32.xlu0 %v2024_v3, %s1931_s23 }
  0x1b   : > { %421 = vrot.lane.b32.xlu1 %v2024_v3, %s1932_s24  ;;  %419 = vrot.lane.b32.xlu0 %v2016_v1, %s1932_s24 }
  0x1f   : > { %425 = vrot.lane.b32.xlu1 %v2022_v2, %s1932_s24  ;;  %423 = vrot.lane.b32.xlu0 %v2014_v0, %s1932_s24 }
  0x23   : > { %446 = vrot.lane.b32.xlu1 %v2024_v3, %s1933_s25  ;;  %444 = vrot.lane.b32.xlu0 %v2016_v1, %s1933_s25 }
  0x27   : > { %450 = vrot.lane.b32.xlu1 %v2022_v2, %s1933_s25  ;;  %448 = vrot.lane.b32.xlu0 %v2014_v0, %s1933_s25 }
  0x2b   : > { %471 = vrot.lane.b32.xlu1 %v2024_v3, %s1934_s26  ;;  %469 = vrot.lane.b32.xlu0 %v2016_v1, %s1934_s26 }
  0x2f   : > { %475 = vrot.lane.b32.xlu1 %v2022_v2, %s1934_s26  ;;  %473 = vrot.lane.b32.xlu0 %v2014_v0, %s1934_s26 }
  0x33   : > { %500 = vrot.lane.b32.xlu1 %v2024_v3, %s1935_s27  ;;  %498 = vrot.lane.b32.xlu0 %v2016_v1, %s1935_s27 }
  0x37   : > { %504 = vrot.lane.b32.xlu1 %v2022_v2, %s1935_s27  ;;  %502 = vrot.lane.b32.xlu0 %v2014_v0, %s1935_s27 }
  0x3b   : > { %525 = vrot.lane.b32.xlu1 %v2024_v3, %s1936_s28  ;;  %523 = vrot.lane.b32.xlu0 %v2016_v1, %s1936_s28 }
  0x3f   : > { %529 = vrot.lane.b32.xlu1 %v2022_v2, %s1936_s28  ;;  %527 = vrot.lane.b32.xlu0 %v2014_v0, %s1936_s28 }
  0x43   : > { %550 = vrot.lane.b32.xlu1 %v2024_v3, %s1937_s29  ;;  %548 = vrot.lane.b32.xlu0 %v2016_v1, %s1937_s29 }
  0x47   : > { %554 = vrot.lane.b32.xlu1 %v2022_v2, %s1937_s29  ;;  %552 = vrot.lane.b32.xlu0 %v2014_v0, %s1937_s29 }
  0x4b   : > { %575 = vrot.lane.b32.xlu1 %v2024_v3, %s1938_s13  ;;  %573 = vrot.lane.b32.xlu0 %v2016_v1, %s1938_s13  ;;  %v2287_v1 = vld [vmem:[%s3238_s9 + $0xc0] sm:$0xff]  ;;  %v2292_v3 = vld [vmem:[%s3238_s9 + $0xc8] sm:$0xff] }
  0x4f   : > { %579 = vrot.lane.b32.xlu1 %v2022_v2, %s1938_s13  ;;  %577 = vrot.lane.b32.xlu0 %v2014_v0, %s1938_s13 }
  0x53   : > { %622 = vperm.xlu0 %1879, %v618_v8   ;;  %627 = vperm.xlu1 %1880, %v619_v9  }
  0x85   : > { %v397_v12 = vpop.permute.xlu1 %396  ;;  %v393_v13 = vpop.permute.xlu0 %392 }
  0x86   : > { %v405_v15 = vsel %vm402_vm1, %v397_v12, %v393_v13  ;;  %v403_v16 = vsel %vm402_vm1, %v393_v13, %v397_v12  ;;  %v2210_v12 = vld [vmem:[%s3238_s9 + $0x78] sm:$0xff]  ;;  %v2215_v13 = vld [vmem:[%s3238_s9 + $0x60] sm:$0xff] }
  0x87   : > { %v412_v24 = vmul.f32 %v2106_v14, %v403_v16  ;;  %v411_v26 = vmul.f32 %v2120_v18, %v405_v15  ;;  %v2220_v15 = vld [vmem:[%s3238_s9 + $0x68] sm:$0xff] }
  0x89   : > { %v399_v20 = vpop.permute.xlu1 %398  ;;  %v395_v21 = vpop.permute.xlu0 %394 }
  0x8a   : > { %v406_v22 = vsel %vm402_vm1, %v399_v20, %v395_v21  ;;  %v404_v23 = vsel %vm402_vm1, %v395_v21, %v399_v20 }
  0x8b   : > { %v414_v25 = vmul.f32 %v2115_v17, %v404_v23  ;;  %v413_v27 = vmul.f32 %v2125_v19, %v406_v22 }
  0x8d   : > { %v422_v28 = vpop.permute.xlu1 %421  ;;  %v420_v29 = vpop.permute.xlu0 %419  ;;  %v416_v30 = vpack.c.bf16 %v414_v25, %v412_v24  ;;  %v415_v31 = vpack.c.bf16 %v413_v27, %v411_v26 }
  0x8f   : > { %643 = vmatprep.subr.bf16.mxu0 %v416_v30 }
  0x90   : > { %644 = vmatpush1.bf16.msra.mxu0 %v415_v31 }
  0x91   : > { %v426_v36 = vpop.permute.xlu1 %425  ;;  %v424_v37 = vpop.permute.xlu0 %423 }
  0x92   : > { %v429_v38 = vsel %vm427_vm2, %v422_v28, %v426_v36  ;;  %v431_v39 = vsel %vm427_vm2, %v426_v36, %v422_v28  ;;  %v428_v40 = vsel %vm427_vm2, %v420_v29, %v424_v37  ;;  %v430_v41 = vsel %vm427_vm2, %v424_v37, %v420_v29  ;;  %v2238_v37 = vld [vmem:[%s3238_s9 + $0xb0] sm:$0xff] }
  0x93   : > { %v438_v42 = vmul.f32 %v2139_v32, %v431_v39  ;;  %v439_v43 = vmul.f32 %v2144_v33, %v429_v38  ;;  %v436_v44 = vmul.f32 %v2149_v34, %v430_v41  ;;  %v437_v45 = vmul.f32 %v2154_v35, %v428_v40  ;;  %v2243_v38 = vld [vmem:[%s3238_s9 + $0xb8] sm:$0xff]  ;;  %v2248_v39 = vld [vmem:[%s3238_s9 + $0xa0] sm:$0xff]  ;;  %v2253_v40 = vld [vmem:[%s3238_s9 + $0xa8] sm:$0xff] }
  0x95   : > { %v447_v46 = vpop.permute.xlu1 %446  ;;  %v445_v47 = vpop.permute.xlu0 %444  ;;  %v441_v48 = vpack.c.bf16 %v439_v43, %v437_v45  ;;  %v440_v49 = vpack.c.bf16 %v438_v42, %v436_v44 }
  0x97   : > { %645 = vmatprep.subr.bf16.mxu0 %v441_v48 }
  0x98   : > { %646 = vmatpush1.bf16.msra.mxu0 %v440_v49 }
  0x99   : > { %v451_v54 = vpop.permute.xlu1 %450  ;;  %v449_v55 = vpop.permute.xlu0 %448 }
  0x9a   : > { %v454_v56 = vsel %vm452_vm3, %v447_v46, %v451_v54  ;;  %v456_v57 = vsel %vm452_vm3, %v451_v54, %v447_v46  ;;  %v453_v58 = vsel %vm452_vm3, %v445_v47, %v449_v55  ;;  %v455_v59 = vsel %vm452_vm3, %v449_v55, %v445_v47 }
  0x9b   : > { %v463_v60 = vmul.f32 %v2172_v50, %v456_v57  ;;  %v464_v61 = vmul.f32 %v2177_v51, %v454_v56  ;;  %v461_v62 = vmul.f32 %v2182_v52, %v455_v59  ;;  %v462_v63 = vmul.f32 %v2187_v53, %v453_v58  ;;  %v2277_v56 = vld [vmem:[%s3238_s9 + $0xd0] sm:$0xff]  ;;  %v2282_v57 = vld [vmem:[%s3238_s9 + $0xd8] sm:$0xff] }
  0x9d   : > { %v472_v6 = vpop.permute.xlu1 %471  ;;  %v470_v7 = vpop.permute.xlu0 %469  ;;  %v466_v8 = vpack.c.bf16 %v464_v61, %v462_v63  ;;  %v465_v9 = vpack.c.bf16 %v463_v60, %v461_v62 }
  0x9f   : > { %647 = vmatprep.subr.bf16.mxu0 %v466_v8 }
  0xa0   : > { %648 = vmatpush1.bf16.msra.mxu0 %v465_v9 }
  0xa1   : > { %v476_v16 = vpop.permute.xlu1 %475  ;;  %v474_v20 = vpop.permute.xlu0 %473 }
  0xa2   : > { %v479_v21 = vsel %vm477_vm4, %v472_v6, %v476_v16  ;;  %v481_v22 = vsel %vm477_vm4, %v476_v16, %v472_v6  ;;  %v478_v23 = vsel %vm477_vm4, %v470_v7, %v474_v20  ;;  %v480_v24 = vsel %vm477_vm4, %v474_v20, %v470_v7 }
  0xa3   : > { %v488_v25 = vmul.f32 %v2205_v10, %v481_v22  ;;  %v489_v26 = vmul.f32 %v2210_v12, %v479_v21  ;;  %v486_v27 = vmul.f32 %v2215_v13, %v480_v24  ;;  %v487_v28 = vmul.f32 %v2220_v15, %v478_v23  ;;  %v2310_v22 = vld [vmem:[%s3238_s9 + $0xf0] sm:$0xff]  ;;  %v2315_v23 = vld [vmem:[%s3238_s9 + $0xf8] sm:$0xff]  ;;  %v2320_v24 = vld [vmem:[%s3238_s9 + $0xe0] sm:$0xff] }
  0xa5   : > { %v501_v29 = vpop.permute.xlu1 %500  ;;  %v499_v30 = vpop.permute.xlu0 %498  ;;  %v491_v31 = vpack.c.bf16 %v489_v26, %v487_v28  ;;  %v490_v36 = vpack.c.bf16 %v488_v25, %v486_v27  ;;  %v2325_v25 = vld [vmem:[%s3238_s9 + $0xe8] sm:$0xff] }
  0xa7   : > { %649 = vmatprep.subr.bf16.mxu0 %v491_v31 }
  0xa8   : > { %650 = vmatpush1.bf16.msra.mxu0 %v490_v36 }
  0xa9   : > { %v505_v41 = vpop.permute.xlu1 %504  ;;  %v503_v42 = vpop.permute.xlu0 %502  ;;  %651 = vmatprep.subr.bf16.mxu0 %v495_v4 }
  0xaa   : > { %v508_v43 = vsel %vm506_vm5, %v501_v29, %v505_v41  ;;  %v510_v44 = vsel %vm506_vm5, %v505_v41, %v501_v29  ;;  %v507_v45 = vsel %vm506_vm5, %v499_v30, %v503_v42  ;;  %v509_v46 = vsel %vm506_vm5, %v503_v42, %v499_v30 }
  0xab   : > { %v517_v47 = vmul.f32 %v2238_v37, %v508_v43  ;;  %v518_v48 = vmul.f32 %v2243_v38, %v510_v44  ;;  %v515_v49 = vmul.f32 %v2248_v39, %v507_v45  ;;  %v516_v0 = vmul.f32 %v2253_v40, %v509_v46 }
  0xac   : > { %652 = vmatpush1.bf16.msra.mxu0 %v494_v5 }
  0xad   : > { %v526_v2 = vpop.permute.xlu1 %525  ;;  %v524_v4 = vpop.permute.xlu0 %523  ;;  %v520_v54 = vpack.c.bf16 %v518_v48, %v516_v0  ;;  %v519_v55 = vpack.c.bf16 %v517_v47, %v515_v49  ;;  %v2343_v48 = vld [vmem:[%s3238_s9 + $0x110] sm:$0xff]  ;;  %v2348_v49 = vld [vmem:[%s3238_s9 + $0x118] sm:$0xff]  ;;  %v2353_v0 = vld [vmem:[%s3238_s9 + $0x100] sm:$0xff] }
  0xae   : > { %3245 = vst [vmem:[#allocation4_spill] sm:$0xff] %v2348_v49 }
  0xaf   : > { %653 = vmatprep.subr.bf16.mxu0 %v520_v54 }
  0xb0   : > { %654 = vmatpush1.bf16.msra.mxu0 %v519_v55 }
  0xb1   : > { %v530_v5 = vpop.permute.xlu1 %529  ;;  %v528_v58 = vpop.permute.xlu0 %527 }
  0xb2   : > { %v533_v59 = vsel %vm531_vm6, %v526_v2, %v530_v5  ;;  %v535_v60 = vsel %vm531_vm6, %v530_v5, %v526_v2  ;;  %v532_v61 = vsel %vm531_vm6, %v524_v4, %v528_v58  ;;  %v534_v62 = vsel %vm531_vm6, %v528_v58, %v524_v4  ;;  %v2358_v2 = vld [vmem:[%s3238_s9 + $0x108] sm:$0xff] }
  0xb3   : > { %v542_v63 = vmul.f32 %v2277_v56, %v533_v59  ;;  %v543_v6 = vmul.f32 %v2282_v57, %v535_v60  ;;  %v540_v7 = vmul.f32 %v2287_v1, %v532_v61  ;;  %v541_v8 = vmul.f32 %v2292_v3, %v534_v62 }
  0xb5   : > { %v551_v9 = vpop.permute.xlu1 %550  ;;  %v549_v16 = vpop.permute.xlu0 %548  ;;  %v545_v20 = vpack.c.bf16 %v543_v6, %v541_v8  ;;  %v544_v21 = vpack.c.bf16 %v542_v63, %v540_v7  ;;  %v1911_v8 = vld [vmem:[%s3230_s1] ss:$8 sps:$4 sm:$0xff]  }
  0xb7   : > { %655 = vmatprep.subr.bf16.mxu0 %v545_v20 }
  0xb8   : > { %656 = vmatpush1.bf16.msra.mxu0 %v544_v21 }
  0xb9   : > { %v555_v26 = vpop.permute.xlu1 %554  ;;  %v553_v27 = vpop.permute.xlu0 %552 }
  0xba   : > { %v558_v28 = vsel %vm556_vm7, %v551_v9, %v555_v26  ;;  %v560_v29 = vsel %vm556_vm7, %v555_v26, %v551_v9  ;;  %v557_v30 = vsel %vm556_vm7, %v549_v16, %v553_v27  ;;  %v559_v31 = vsel %vm556_vm7, %v553_v27, %v549_v16 }
  0xbb   : > { %v567_v36 = vmul.f32 %v2310_v22, %v558_v28  ;;  %v568_v41 = vmul.f32 %v2315_v23, %v560_v29  ;;  %v565_v42 = vmul.f32 %v2320_v24, %v557_v30  ;;  %v566_v43 = vmul.f32 %v2325_v25, %v559_v31 }
  0xbd   : > { %v576_v44 = vpop.permute.xlu1 %575  ;;  %v574_v45 = vpop.permute.xlu0 %573  ;;  %v570_v46 = vpack.c.bf16 %v568_v41, %v566_v43  ;;  %v569_v47 = vpack.c.bf16 %v567_v36, %v565_v42  ;;  %v1916_v42 = vld [vmem:[%s3232_s3 + $0x4] ss:$8 sps:$4 sm:$0xff]  }
  0xbe   : > { %1765 = vmatprep.mubr.msk.bf16.mxu1 %vm639_vm0, %v1916_v42  ;;  %v902_v43 = vld [vmem:[%s3233_s4] sm:$0xff] }
  0xbf   : > { %657 = vmatprep.subr.bf16.mxu0 %v570_v46 }
  0xc0   : > { %658 = vmatpush1.bf16.msra.mxu0 %v569_v47 }
  0xc1   : > { %v580_v4 = vpop.permute.xlu1 %579  ;;  %v578_v54 = vpop.permute.xlu0 %577 }
  0xc2   : > { %v583_v55 = vsel %vm581_vm8, %v576_v44, %v580_v4  ;;  %v585_v5 = vsel %vm581_vm8, %v580_v4, %v576_v44  ;;  %v582_v58 = vsel %vm581_vm8, %v574_v45, %v578_v54  ;;  %v584_v59 = vsel %vm581_vm8, %v578_v54, %v574_v45  ;;  %v903_v44 = vld [vmem:[%s3233_s4 + $0x8] sm:$0xff] }
  0xc3   : > { %v592_v60 = vmul.f32 %v2343_v48, %v583_v55  ;;  %v593_v61 = vmul.f32 %v2348_v49, %v585_v5  ;;  %v590_v62 = vmul.f32 %v2353_v0, %v582_v58  ;;  %v591_v63 = vmul.f32 %v2358_v2, %v584_v59 }
  0xc5   : > { %v595_v6 = vpack.c.bf16 %v593_v61, %v591_v63  ;;  %v594_v7 = vpack.c.bf16 %v592_v60, %v590_v62 }
  0xc7   : > { %659 = vmatprep.subr.bf16.mxu0 %v595_v6 }
  0xc8   : > { %660 = vmatpush1.bf16.msra.mxu0 %v594_v7 }
  0xcb   : > { %676 = vmatmul.mubr.bf16.vlgmr.msra.gmra.mrb[0].mxu0 %v1911_v8 }
  0xd2   : > { %v623_v9 = vpop.permute.xlu0 %622  ;;  %v628_v20 = vpop.permute.xlu1 %627 }
 0x19e   : > { %v677_v16 = vpop.f32.mrb[0].mxu0 }
 0x19f   : > { %v2375_v21 = vadd.f32 %v677_v16, %v623_v9  ;;  %v679_v26 = vpop.f32.mrb[1].mxu0 }
 0x1a0   : > { %v681_v27 = vpop.f32.mrb[2].mxu0  ;;  %v2381_v30 = vadd.f32 %v679_v26, %v623_v9 }
 0x1a1   : > { %v2377_v28 = vadd.f32 %v681_v27, %v628_v20  ;;  %v683_v29 = vpop.f32.mrb[3].mxu0  ;;  %686 = vrot.lane.b32.xlu1 %v2375_v21, %s1931_s23 }
 0x1a2   : > { %v2383_v31 = vadd.f32 %v683_v29, %v628_v20 }
 0x1a3   : > { %688 = vrot.lane.b32.xlu0 %v2377_v28, %s1931_s23 }
 0x1a5   : > { %710 = vrot.lane.b32.xlu1 %v2375_v21, %s1932_s24 }
 0x1a7   : > { %712 = vrot.lane.b32.xlu0 %v2377_v28, %s1932_s24 }
 0x1a9   : > { %734 = vrot.lane.b32.xlu1 %v2375_v21, %s1933_s25 }
 0x1ab   : > { %736 = vrot.lane.b32.xlu0 %v2377_v28, %s1933_s25 }
 0x1ad   : > { %758 = vrot.lane.b32.xlu1 %v2375_v21, %s1934_s26 }
 0x1af   : > { %760 = vrot.lane.b32.xlu0 %v2377_v28, %s1934_s26 }
 0x1b1   : > { %786 = vrot.lane.b32.xlu1 %v2375_v21, %s1935_s27 }
 0x1b3   : > { %788 = vrot.lane.b32.xlu0 %v2377_v28, %s1935_s27 }
 0x1b5   : > { %810 = vrot.lane.b32.xlu1 %v2375_v21, %s1936_s28 }
 0x1b7   : > { %812 = vrot.lane.b32.xlu0 %v2377_v28, %s1936_s28 }
 0x1b9   : > { %834 = vrot.lane.b32.xlu1 %v2375_v21, %s1937_s29 }
 0x1bb   : > { %836 = vrot.lane.b32.xlu0 %v2377_v28, %s1937_s29 }
 0x1bd   : > { %690 = vrot.lane.b32.xlu1 %v2381_v30, %s1931_s23 }
 0x1bf   : > { %692 = vrot.lane.b32.xlu0 %v2383_v31, %s1931_s23 }
 0x1c1   : > { %714 = vrot.lane.b32.xlu1 %v2381_v30, %s1932_s24 }
 0x1c3   : > { %716 = vrot.lane.b32.xlu0 %v2383_v31, %s1932_s24 }
 0x1c5   : > { %738 = vrot.lane.b32.xlu1 %v2381_v30, %s1933_s25 }
 0x1c7   : > { %740 = vrot.lane.b32.xlu0 %v2383_v31, %s1933_s25 }
 0x1c9   : > { %762 = vrot.lane.b32.xlu1 %v2381_v30, %s1934_s26 }
 0x1cb   : > { %764 = vrot.lane.b32.xlu0 %v2383_v31, %s1934_s26 }
 0x1cd   : > { %858 = vrot.lane.b32.xlu1 %v2375_v21, %s1938_s13 }
 0x1cf   : > { %860 = vrot.lane.b32.xlu0 %v2377_v28, %s1938_s13 }
 0x1d1   : > { %790 = vrot.lane.b32.xlu1 %v2381_v30, %s1935_s27 }
 0x1d3   : > { %792 = vrot.lane.b32.xlu0 %v2383_v31, %s1935_s27 }
 0x1d5   : > { %814 = vrot.lane.b32.xlu1 %v2381_v30, %s1936_s28 }
 0x1d7   : > { %816 = vrot.lane.b32.xlu0 %v2383_v31, %s1936_s28 }
 0x1d9   : > { %838 = vrot.lane.b32.xlu1 %v2381_v30, %s1937_s29 }
 0x1db   : > { %840 = vrot.lane.b32.xlu0 %v2383_v31, %s1937_s29 }
 0x1dd   : > { %862 = vrot.lane.b32.xlu1 %v2381_v30, %s1938_s13 }
 0x1df   : > { %864 = vrot.lane.b32.xlu0 %v2383_v31, %s1938_s13 }
 0x1e1   : > { %906 = vperm.xlu1 %1880, %v902_v43  }
 0x1e3   : > { %911 = vperm.xlu0 %1879, %v903_v44  }
 0x213   : > { %v687_v45 = vpop.permute.xlu1 %686 }
 0x215   : > { %v689_v46 = vpop.permute.xlu0 %688 }
 0x217   : > { %v711_v47 = vpop.permute.xlu1 %710 }
 0x219   : > { %v713_v4 = vpop.permute.xlu0 %712 }
 0x21b   : > { %v735_v54 = vpop.permute.xlu1 %734 }
 0x21d   : > { %v737_v55 = vpop.permute.xlu0 %736 }
 0x21f   : > { %v759_v5 = vpop.permute.xlu1 %758 }
 0x221   : > { %v761_v58 = vpop.permute.xlu0 %760 }
 0x223   : > { %v2461_v59 = vpop.permute.xlu1 %786 }
 0x225   : > { %v2463_v60 = vpop.permute.xlu0 %788 }
 0x227   : > { %v2465_v61 = vpop.permute.xlu1 %810 }
 0x229   : > { %v2467_v62 = vpop.permute.xlu0 %812 }
 0x22b   : > { %v2469_v63 = vpop.permute.xlu1 %834 }
 0x22d   : > { %v2471_v6 = vpop.permute.xlu0 %836 }
 0x22f   : > { %v691_v7 = vpop.permute.xlu1 %690 }
 0x230   : > { %v694_v8 = vsel %vm402_vm1, %v687_v45, %v691_v7  ;;  %v696_v9 = vsel %vm402_vm1, %v691_v7, %v687_v45 }
 0x231   : > { %v693_v16 = vpop.permute.xlu0 %692  ;;  %v702_v27 = vmul.f32 %v696_v9, %v2120_v18  ;;  %v703_v43 = vmul.f32 %v694_v8, %v2106_v14 }
 0x232   : > { %v695_v20 = vsel %vm402_vm1, %v689_v46, %v693_v16  ;;  %v697_v26 = vsel %vm402_vm1, %v693_v16, %v689_v46 }
 0x233   : > { %v704_v29 = vmul.f32 %v697_v26, %v2125_v19  ;;  %v715_v42 = vpop.permute.xlu1 %714  ;;  %v705_v44 = vmul.f32 %v695_v20, %v2115_v17 }
 0x234   : > { %v718_v36 = vsel %vm427_vm2, %v711_v47, %v715_v42  ;;  %v720_v45 = vsel %vm427_vm2, %v715_v42, %v711_v47 }
 0x235   : > { %v717_v7 = vpop.permute.xlu0 %716  ;;  %v707_v41 = vpack.c.bf16 %v705_v44, %v703_v43  ;;  %v706_v49 = vpack.c.bf16 %v704_v29, %v702_v27  ;;  %v726_v16 = vmul.f32 %v720_v45, %v2149_v34  ;;  %v727_v8 = vmul.f32 %v718_v36, %v2154_v35 }
 0x236   : > { %v719_v46 = vsel %vm427_vm2, %v713_v4, %v717_v7  ;;  %v721_v9 = vsel %vm427_vm2, %v717_v7, %v713_v4 }
 0x237   : > { %v728_v20 = vmul.f32 %v721_v9, %v2139_v32  ;;  %v729_v26 = vmul.f32 %v719_v46, %v2144_v33  ;;  %926 = vmatprep.subr.bf16.mxu1 %v707_v41  ;;  %v739_v17 = vpop.permute.xlu1 %738 }
 0x238   : > { %v742_v47 = vsel %vm452_vm3, %v735_v54, %v739_v17  ;;  %v744_v27 = vsel %vm452_vm3, %v739_v17, %v735_v54  ;;  %927 = vmatpush1.bf16.msra.mxu1 %v706_v49 }
 0x239   : > { %v741_v29 = vpop.permute.xlu0 %740  ;;  %v731_v42 = vpack.c.bf16 %v729_v26, %v727_v8  ;;  %v730_v4 = vpack.c.bf16 %v728_v20, %v726_v16  ;;  %v750_v44 = vmul.f32 %v744_v27, %v2182_v52  ;;  %v751_v41 = vmul.f32 %v742_v47, %v2187_v53 }
 0x23a   : > { %v743_v43 = vsel %vm452_vm3, %v737_v55, %v741_v29  ;;  %v745_v36 = vsel %vm452_vm3, %v741_v29, %v737_v55 }
 0x23b   : > { %v752_v45 = vmul.f32 %v745_v36, %v2172_v50  ;;  %v753_v7 = vmul.f32 %v743_v43, %v2177_v51  ;;  %928 = vmatprep.subr.bf16.mxu1 %v731_v42  ;;  %v763_v17 = vpop.permute.xlu1 %762 }
 0x23c   : > { %v766_v49 = vsel %vm477_vm4, %v759_v5, %v763_v17  ;;  %v768_v54 = vsel %vm477_vm4, %v763_v17, %v759_v5  ;;  %929 = vmatpush1.bf16.msra.mxu1 %v730_v4 }
 0x23d   : > { %v765_v46 = vpop.permute.xlu0 %764  ;;  %v755_v9 = vpack.c.bf16 %v753_v7, %v751_v41  ;;  %v754_v55 = vpack.c.bf16 %v752_v45, %v750_v44  ;;  %v774_v20 = vmul.f32 %v768_v54, %v2215_v13  ;;  %v775_v26 = vmul.f32 %v766_v49, %v2220_v15 }
 0x23e   : > { %v767_v16 = vsel %vm477_vm4, %v761_v58, %v765_v46  ;;  %v769_v8 = vsel %vm477_vm4, %v765_v46, %v761_v58  ;;  %v3246_v41 = vpack.c.bf16 %v2383_v31, %v2381_v30 }
 0x23f   : > { %v776_v47 = vmul.f32 %v769_v8, %v2205_v10  ;;  %v777_v27 = vmul.f32 %v767_v16, %v2210_v12  ;;  %930 = vmatprep.subr.bf16.mxu1 %v755_v9  ;;  %v859_v5 = vpop.permute.xlu1 %858 }
 0x240   : > { %931 = vmatpush1.bf16.msra.mxu1 %v754_v55 }
 0x241   : > { %v861_v29 = vpop.permute.xlu0 %860  ;;  %v779_v42 = vpack.c.bf16 %v777_v27, %v775_v26  ;;  %v778_v4 = vpack.c.bf16 %v776_v47, %v774_v20 }
 0x243   : > { %932 = vmatprep.subr.bf16.mxu1 %v779_v42  ;;  %v791_v43 = vpop.permute.xlu1 %790 }
 0x244   : > { %v794_v58 = vsel %vm506_vm5, %v2461_v59, %v791_v43  ;;  %v796_v36 = vsel %vm506_vm5, %v791_v43, %v2461_v59  ;;  %933 = vmatpush1.bf16.msra.mxu1 %v778_v4 }
 0x245   : > { %v793_v44 = vpop.permute.xlu0 %792  ;;  %934 = vmatprep.subr.bf16.mxu1 %v3246_v41  ;;  %v802_v17 = vmul.f32 %v794_v58, %v2248_v39  ;;  %v803_v49 = vmul.f32 %v796_v36, %v2253_v40 }
 0x246   : > { %v795_v45 = vsel %vm506_vm5, %v2463_v60, %v793_v44  ;;  %v797_v7 = vsel %vm506_vm5, %v793_v44, %v2463_v60  ;;  %v3247_v60 = vpack.c.bf16 %v2377_v28, %v2375_v21 }
 0x247   : > { %v804_v59 = vmul.f32 %v795_v45, %v2238_v37  ;;  %v805_v54 = vmul.f32 %v797_v7, %v2243_v38  ;;  %v815_v46 = vpop.permute.xlu1 %814 }
 0x248   : > { %v818_v30 = vsel %vm531_vm6, %v2465_v61, %v815_v46  ;;  %v820_v31 = vsel %vm531_vm6, %v815_v46, %v2465_v61  ;;  %935 = vmatpush1.bf16.msra.mxu1 %v3247_v60 }
 0x249   : > { %v817_v9 = vpop.permute.xlu0 %816  ;;  %v807_v55 = vpack.c.bf16 %v805_v54, %v803_v49  ;;  %v806_v16 = vpack.c.bf16 %v804_v59, %v802_v17  ;;  %v826_v26 = vmul.f32 %v818_v30, %v2287_v1  ;;  %v827_v47 = vmul.f32 %v820_v31, %v2292_v3 }
 0x24a   : > { %v819_v8 = vsel %vm531_vm6, %v2467_v62, %v817_v9  ;;  %v821_v20 = vsel %vm531_vm6, %v817_v9, %v2467_v62 }
 0x24b   : > { %v828_v61 = vmul.f32 %v819_v8, %v2277_v56  ;;  %v829_v21 = vmul.f32 %v821_v20, %v2282_v57  ;;  %v839_v28 = vpop.permute.xlu1 %838  ;;  %936 = vmatprep.subr.bf16.mxu1 %v807_v55  ;;  %v3248_v55 = vld [vmem:[#allocation4_spill] sm:$0xff] }
 0x24c   : > { %v842_v27 = vsel %vm556_vm7, %v2469_v63, %v839_v28  ;;  %v844_v42 = vsel %vm556_vm7, %v839_v28, %v2469_v63  ;;  %937 = vmatpush1.bf16.msra.mxu1 %v806_v16  ;;  %v1914_v20 = vld [vmem:[%s3232_s3] ss:$8 sps:$4 sm:$0xff]  }
 0x24d   : > { %v841_v62 = vpop.permute.xlu0 %840  ;;  %v831_v4 = vpack.c.bf16 %v829_v21, %v827_v47  ;;  %v830_v43 = vpack.c.bf16 %v828_v61, %v826_v26  ;;  %v850_v44 = vmul.f32 %v842_v27, %v2320_v24  ;;  %v851_v41 = vmul.f32 %v844_v42, %v2325_v25 }
 0x24e   : > { %v843_v58 = vsel %vm556_vm7, %v2471_v6, %v841_v62  ;;  %v845_v36 = vsel %vm556_vm7, %v841_v62, %v2471_v6 }
 0x24f   : > { %v852_v45 = vmul.f32 %v843_v58, %v2310_v22  ;;  %v853_v63 = vmul.f32 %v845_v36, %v2315_v23  ;;  %v863_v7 = vpop.permute.xlu1 %862  ;;  %938 = vmatprep.subr.bf16.mxu1 %v831_v4  ;;  %v1917_v36 = vld [vmem:[%s3234_s5 + $0x4] ss:$8 sps:$4 sm:$0xff]  }
 0x250   : > { %v866_v17 = vsel %vm581_vm8, %v859_v5, %v863_v7  ;;  %v868_v49 = vsel %vm581_vm8, %v863_v7, %v859_v5  ;;  %939 = vmatpush1.bf16.msra.mxu1 %v830_v43  ;;  %1768 = vmatprep.mubr.msk.bf16.mxu0 %vm639_vm0, %v1917_v36  ;;  %v3249_v36 = vld [vmem:[#allocation3_spill] sm:$0xff] }
 0x251   : > { %v865_v59 = vpop.permute.xlu0 %864  ;;  %v855_v54 = vpack.c.bf16 %v853_v63, %v851_v41  ;;  %v854_v6 = vpack.c.bf16 %v852_v45, %v850_v44  ;;  %v874_v31 = vmul.f32 %v866_v17, %v2353_v0  ;;  %v875_v60 = vmul.f32 %v868_v49, %v2358_v2  ;;  %v1185_v44 = vld [vmem:[%s3235_s6] sm:$0xff]  ;;  %v1186_v41 = vld [vmem:[%s3235_s6 + $0x8] sm:$0xff] }
 0x252   : > { %v867_v46 = vsel %vm581_vm8, %v861_v29, %v865_v59  ;;  %v869_v30 = vsel %vm581_vm8, %v865_v59, %v861_v29 }
 0x253   : > { %v876_v9 = vmul.f32 %v867_v46, %v2343_v48  ;;  %v877_v16 = vmul.f32 %v869_v30, %v3248_v55  ;;  %940 = vmatprep.subr.bf16.mxu1 %v855_v54 }
 0x254   : > { %941 = vmatpush1.bf16.msra.mxu1 %v854_v6 }
 0x255   : > { %v879_v5 = vpack.c.bf16 %v877_v16, %v875_v60  ;;  %v878_v8 = vpack.c.bf16 %v876_v9, %v874_v31 }
 0x257   : > { %942 = vmatprep.subr.bf16.mxu1 %v879_v5 }
 0x258   : > { %943 = vmatpush1.bf16.msra.mxu1 %v878_v8 }
 0x25b   : > { %959 = vmatmul.mubr.bf16.vlgmr.msra.gmra.mrb[0].mxu1 %v1914_v20 }
 0x260   : > { %v907_v29 = vpop.permute.xlu1 %906 }
 0x262   : > { %v912_v21 = vpop.permute.xlu0 %911 }
 0x32e   : > { %v960_v26 = vpop.f32.mrb[0].mxu1 }
 0x32f   : > { %v2590_v47 = vadd.f32 %v960_v26, %v907_v29  ;;  %v962_v61 = vpop.f32.mrb[1].mxu1 }
 0x330   : > { %v964_v28 = vpop.f32.mrb[2].mxu1  ;;  %v2596_v62 = vadd.f32 %v962_v61, %v907_v29 }
 0x331   : > { %v2592_v27 = vadd.f32 %v964_v28, %v912_v21  ;;  %v966_v42 = vpop.f32.mrb[3].mxu1  ;;  %969 = vrot.lane.b32.xlu1 %v2590_v47, %s1931_s23 }
 0x332   : > { %v2598_v4 = vadd.f32 %v966_v42, %v912_v21 }
 0x333   : > { %971 = vrot.lane.b32.xlu0 %v2592_v27, %s1931_s23 }
 0x335   : > { %993 = vrot.lane.b32.xlu1 %v2590_v47, %s1932_s24 }
 0x337   : > { %995 = vrot.lane.b32.xlu0 %v2592_v27, %s1932_s24 }
 0x339   : > { %1017 = vrot.lane.b32.xlu1 %v2590_v47, %s1933_s25 }
 0x33b   : > { %1019 = vrot.lane.b32.xlu0 %v2592_v27, %s1933_s25 }
 0x33d   : > { %1041 = vrot.lane.b32.xlu1 %v2590_v47, %s1934_s26 }
 0x33f   : > { %1043 = vrot.lane.b32.xlu0 %v2592_v27, %s1934_s26 }
 0x341   : > { %1069 = vrot.lane.b32.xlu1 %v2590_v47, %s1935_s27 }
 0x343   : > { %1071 = vrot.lane.b32.xlu0 %v2592_v27, %s1935_s27 }
 0x345   : > { %1093 = vrot.lane.b32.xlu1 %v2590_v47, %s1936_s28 }
 0x347   : > { %1095 = vrot.lane.b32.xlu0 %v2592_v27, %s1936_s28 }
 0x349   : > { %1117 = vrot.lane.b32.xlu1 %v2590_v47, %s1937_s29 }
 0x34b   : > { %1119 = vrot.lane.b32.xlu0 %v2592_v27, %s1937_s29 }
 0x34d   : > { %973 = vrot.lane.b32.xlu1 %v2596_v62, %s1931_s23 }
 0x34f   : > { %975 = vrot.lane.b32.xlu0 %v2598_v4, %s1931_s23 }
 0x351   : > { %997 = vrot.lane.b32.xlu1 %v2596_v62, %s1932_s24 }
 0x353   : > { %999 = vrot.lane.b32.xlu0 %v2598_v4, %s1932_s24 }
 0x355   : > { %1021 = vrot.lane.b32.xlu1 %v2596_v62, %s1933_s25 }
 0x357   : > { %1023 = vrot.lane.b32.xlu0 %v2598_v4, %s1933_s25 }
 0x359   : > { %1045 = vrot.lane.b32.xlu1 %v2596_v62, %s1934_s26 }
 0x35b   : > { %1047 = vrot.lane.b32.xlu0 %v2598_v4, %s1934_s26 }
 0x35d   : > { %1141 = vrot.lane.b32.xlu1 %v2590_v47, %s1938_s13 }
 0x35f   : > { %1143 = vrot.lane.b32.xlu0 %v2592_v27, %s1938_s13 }
 0x361   : > { %1073 = vrot.lane.b32.xlu1 %v2596_v62, %s1935_s27 }
 0x363   : > { %1075 = vrot.lane.b32.xlu0 %v2598_v4, %s1935_s27 }
 0x365   : > { %1097 = vrot.lane.b32.xlu1 %v2596_v62, %s1936_s28 }
 0x367   : > { %1099 = vrot.lane.b32.xlu0 %v2598_v4, %s1936_s28 }
 0x369   : > { %1121 = vrot.lane.b32.xlu1 %v2596_v62, %s1937_s29 }
 0x36b   : > { %1123 = vrot.lane.b32.xlu0 %v2598_v4, %s1937_s29 }
 0x36d   : > { %1145 = vrot.lane.b32.xlu1 %v2596_v62, %s1938_s13 }
 0x36f   : > { %1147 = vrot.lane.b32.xlu0 %v2598_v4, %s1938_s13 }
 0x371   : > { %1189 = vperm.xlu1 %1880, %v1185_v44  }
 0x373   : > { %1194 = vperm.xlu0 %1879, %v1186_v41  }
 0x3a3   : > { %v970_v45 = vpop.permute.xlu1 %969 }
 0x3a5   : > { %v972_v63 = vpop.permute.xlu0 %971 }
 0x3a7   : > { %v994_v7 = vpop.permute.xlu1 %993 }
 0x3a9   : > { %v996_v17 = vpop.permute.xlu0 %995 }
 0x3ab   : > { %v1018_v49 = vpop.permute.xlu1 %1017 }
 0x3ad   : > { %v1020_v59 = vpop.permute.xlu0 %1019 }
 0x3af   : > { %v1042_v54 = vpop.permute.xlu1 %1041 }
 0x3b1   : > { %v1044_v6 = vpop.permute.xlu0 %1043 }
 0x3b3   : > { %v2676_v46 = vpop.permute.xlu1 %1069 }
 0x3b5   : > { %v2678_v30 = vpop.permute.xlu0 %1071 }
 0x3b7   : > { %v2680_v31 = vpop.permute.xlu1 %1093 }
 0x3b9   : > { %v2682_v60 = vpop.permute.xlu0 %1095 }
 0x3bb   : > { %v2684_v9 = vpop.permute.xlu1 %1117 }
 0x3bd   : > { %v2686_v16 = vpop.permute.xlu0 %1119 }
 0x3bf   : > { %v974_v5 = vpop.permute.xlu1 %973 }
 0x3c0   : > { %v977_v8 = vsel %vm402_vm1, %v970_v45, %v974_v5  ;;  %v979_v20 = vsel %vm402_vm1, %v974_v5, %v970_v45 }
 0x3c1   : > { %v976_v29 = vpop.permute.xlu0 %975  ;;  %v985_v21 = vmul.f32 %v979_v20, %v2120_v18  ;;  %v986_v28 = vmul.f32 %v977_v8, %v2106_v14 }
 0x3c2   : > { %v978_v26 = vsel %vm402_vm1, %v972_v63, %v976_v29  ;;  %v980_v61 = vsel %vm402_vm1, %v976_v29, %v972_v63 }
 0x3c3   : > { %v987_v42 = vmul.f32 %v980_v61, %v2125_v19  ;;  %v988_v44 = vmul.f32 %v978_v26, %v3249_v36  ;;  %v998_v41 = vpop.permute.xlu1 %997 }
 0x3c4   : > { %v1001_v43 = vsel %vm427_vm2, %v994_v7, %v998_v41  ;;  %v1003_v45 = vsel %vm427_vm2, %v998_v41, %v994_v7 }
 0x3c5   : > { %v989_v5 = vpack.c.bf16 %v987_v42, %v985_v21  ;;  %v1000_v58 = vpop.permute.xlu0 %999  ;;  %v990_v55 = vpack.c.bf16 %v988_v44, %v986_v28  ;;  %v1009_v18 = vmul.f32 %v1003_v45, %v2149_v34  ;;  %v1010_v19 = vmul.f32 %v1001_v43, %v2154_v35 }
 0x3c6   : > { %v1002_v63 = vsel %vm427_vm2, %v996_v17, %v1000_v58  ;;  %v1004_v14 = vsel %vm427_vm2, %v1000_v58, %v996_v17 }
 0x3c7   : > { %v1011_v8 = vmul.f32 %v1004_v14, %v2139_v32  ;;  %v1012_v20 = vmul.f32 %v1002_v63, %v2144_v33  ;;  %1209 = vmatprep.subr.bf16.mxu0 %v990_v55  ;;  %v1022_v29 = vpop.permute.xlu1 %1021 }
 0x3c8   : > { %v1025_v7 = vsel %vm452_vm3, %v1018_v49, %v1022_v29  ;;  %v1027_v26 = vsel %vm452_vm3, %v1022_v29, %v1018_v49  ;;  %1210 = vmatpush1.bf16.msra.mxu0 %v989_v5 }
 0x3c9   : > { %v1013_v61 = vpack.c.bf16 %v1011_v8, %v1009_v18  ;;  %v1024_v21 = vpop.permute.xlu0 %1023  ;;  %v1014_v58 = vpack.c.bf16 %v1012_v20, %v1010_v19  ;;  %v1033_v33 = vmul.f32 %v1027_v26, %v2182_v52  ;;  %v1034_v35 = vmul.f32 %v1025_v7, %v2187_v53 }
 0x3ca   : > { %v1026_v34 = vsel %vm452_vm3, %v1020_v59, %v1024_v21  ;;  %v1028_v32 = vsel %vm452_vm3, %v1024_v21, %v1020_v59 }
 0x3cb   : > { %v1035_v55 = vmul.f32 %v1028_v32, %v2172_v50  ;;  %v1036_v43 = vmul.f32 %v1026_v34, %v2177_v51  ;;  %1211 = vmatprep.subr.bf16.mxu0 %v1014_v58  ;;  %v1046_v17 = vpop.permute.xlu1 %1045 }
 0x3cc   : > { %v1049_v49 = vsel %vm477_vm4, %v1042_v54, %v1046_v17  ;;  %v1051_v28 = vsel %vm477_vm4, %v1046_v17, %v1042_v54  ;;  %1212 = vmatpush1.bf16.msra.mxu0 %v1013_v61 }
 0x3cd   : > { %v1037_v42 = vpack.c.bf16 %v1035_v55, %v1033_v33  ;;  %v1048_v36 = vpop.permute.xlu0 %1047  ;;  %v1038_v59 = vpack.c.bf16 %v1036_v43, %v1034_v35  ;;  %v1057_v51 = vmul.f32 %v1051_v28, %v2215_v13  ;;  %v1058_v53 = vmul.f32 %v1049_v49, %v2220_v15 }
 0x3ce   : > { %v1050_v52 = vsel %vm477_vm4, %v1044_v6, %v1048_v36  ;;  %v1052_v50 = vsel %vm477_vm4, %v1048_v36, %v1044_v6 }
 0x3cf   : > { %v1059_v44 = vmul.f32 %v1052_v50, %v2205_v10  ;;  %v1060_v41 = vmul.f32 %v1050_v52, %v2210_v12  ;;  %1213 = vmatprep.subr.bf16.mxu0 %v1038_v59  ;;  %v1142_v54 = vpop.permute.xlu1 %1141  ;;  %v3250_v12 = vpack.c.bf16 %v2598_v4, %v2596_v62  ;;  %v1919_v50 = vld [vmem:[%s3234_s5] ss:$8 sps:$4 sm:$0xff]  }
 0x3d0   : > { %1214 = vmatpush1.bf16.msra.mxu0 %v1037_v42  ;;  %v3252_v42 = vld [vmem:[#allocation4_spill] sm:$0xff] }
 0x3d1   : > { %v1061_v45 = vpack.c.bf16 %v1059_v44, %v1057_v51  ;;  %v1144_v5 = vpop.permute.xlu0 %1143  ;;  %v1062_v63 = vpack.c.bf16 %v1060_v41, %v1058_v53 }
 0x3d3   : > { %1215 = vmatprep.subr.bf16.mxu0 %v1062_v63  ;;  %v1074_v14 = vpop.permute.xlu1 %1073 }
 0x3d4   : > { %v1077_v6 = vsel %vm506_vm5, %v2676_v46, %v1074_v14  ;;  %v1079_v13 = vsel %vm506_vm5, %v1074_v14, %v2676_v46  ;;  %1216 = vmatpush1.bf16.msra.mxu0 %v1061_v45 }
 0x3d5   : > { %v1076_v10 = vpop.permute.xlu0 %1075  ;;  %1217 = vmatprep.subr.bf16.mxu0 %v3250_v12  ;;  %v1085_v19 = vmul.f32 %v1077_v6, %v2248_v39  ;;  %v1086_v8 = vmul.f32 %v1079_v13, %v2253_v40  ;;  %v1920_v6 = vld [vmem:[%s3236_s7 + $0x4] ss:$8 sps:$4 sm:$0xff]  }
 0x3d6   : > { %v1078_v15 = vsel %vm506_vm5, %v2678_v30, %v1076_v10  ;;  %v1080_v18 = vsel %vm506_vm5, %v1076_v10, %v2678_v30  ;;  %v3251_v30 = vpack.c.bf16 %v2592_v27, %v2590_v47  ;;  %1771 = vmatprep.mubr.msk.bf16.mxu1 %vm639_vm0, %v1920_v6  ;;  %v1468_v13 = vld [vmem:[%s3237_s8] sm:$0xff]  ;;  %v1469_v10 = vld [vmem:[%s3237_s8 + $0x8] sm:$0xff] }
 0x3d7   : > { %v1087_v46 = vmul.f32 %v1078_v15, %v2238_v37  ;;  %v1088_v20 = vmul.f32 %v1080_v18, %v2243_v38  ;;  %v1098_v29 = vpop.permute.xlu1 %1097 }
 0x3d8   : > { %v1101_v62 = vsel %vm531_vm6, %v2680_v31, %v1098_v29  ;;  %v1103_v4 = vsel %vm531_vm6, %v1098_v29, %v2680_v31  ;;  %1218 = vmatpush1.bf16.msra.mxu0 %v3251_v30 }
 0x3d9   : > { %v1089_v39 = vpack.c.bf16 %v1087_v46, %v1085_v19  ;;  %v1100_v7 = vpop.permute.xlu0 %1099  ;;  %v1090_v40 = vpack.c.bf16 %v1088_v20, %v1086_v8  ;;  %v1109_v26 = vmul.f32 %v1101_v62, %v2287_v1  ;;  %v1110_v61 = vmul.f32 %v1103_v4, %v2292_v3 }
 0x3da   : > { %v1102_v37 = vsel %vm531_vm6, %v2682_v60, %v1100_v7  ;;  %v1104_v38 = vsel %vm531_vm6, %v1100_v7, %v2682_v60 }
 0x3db   : > { %v1111_v31 = vmul.f32 %v1102_v37, %v2277_v56  ;;  %v1112_v47 = vmul.f32 %v1104_v38, %v2282_v57  ;;  %v1122_v27 = vpop.permute.xlu1 %1121  ;;  %1219 = vmatprep.subr.bf16.mxu0 %v1090_v40  ;;  %v1264_v37 = vld [vmem:[%s3238_s9] sm:$0xff] }
 0x3dc   : > { %v1125_v21 = vsel %vm556_vm7, %v2684_v9, %v1122_v27  ;;  %v1127_v58 = vsel %vm556_vm7, %v1122_v27, %v2684_v9  ;;  %1220 = vmatpush1.bf16.msra.mxu0 %v1089_v39  ;;  %v1267_v27 = vld [vmem:[%s3238_s9 + $0x18] sm:$0xff] }
 0x3dd   : > { %v1113_v60 = vpack.c.bf16 %v1111_v31, %v1109_v26  ;;  %v1124_v34 = vpop.permute.xlu0 %1123  ;;  %v1114_v1 = vpack.c.bf16 %v1112_v47, %v1110_v61  ;;  %v1133_v3 = vmul.f32 %v1125_v21, %v2320_v24  ;;  %v1134_v32 = vmul.f32 %v1127_v58, %v2325_v25  ;;  %v1265_v26 = vld [vmem:[%s3238_s9 + $0x8] sm:$0xff]  ;;  %v1266_v47 = vld [vmem:[%s3238_s9 + $0x10] sm:$0xff] }
 0x3de   : > { %v1126_v56 = vsel %vm556_vm7, %v2686_v16, %v1124_v34  ;;  %v1128_v57 = vsel %vm556_vm7, %v1124_v34, %v2686_v16 }
 0x3df   : > { %v1135_v33 = vmul.f32 %v1126_v56, %v2310_v22  ;;  %v1136_v9 = vmul.f32 %v1128_v57, %v2315_v23  ;;  %v1146_v35 = vpop.permute.xlu1 %1145  ;;  %1221 = vmatprep.subr.bf16.mxu0 %v1114_v1 }
 0x3e0   : > { %v1149_v55 = vsel %vm581_vm8, %v1142_v54, %v1146_v35  ;;  %v1151_v43 = vsel %vm581_vm8, %v1146_v35, %v1142_v54  ;;  %1222 = vmatpush1.bf16.msra.mxu0 %v1113_v60 }
 0x3e1   : > { %v1137_v17 = vpack.c.bf16 %v1135_v33, %v1133_v3  ;;  %v1148_v49 = vpop.permute.xlu0 %1147  ;;  %v1138_v16 = vpack.c.bf16 %v1136_v9, %v1134_v32  ;;  %v1157_v23 = vmul.f32 %v1149_v55, %v2353_v0  ;;  %v1158_v25 = vmul.f32 %v1151_v43, %v2358_v2  ;;  %v1288_v3 = vld [vmem:[%s3238_s9 + $0x20] sm:$0xff]  ;;  %v1289_v33 = vld [vmem:[%s3238_s9 + $0x28] sm:$0xff]  ;;  %v1290_v55 = vld [vmem:[%s3238_s9 + $0x30] sm:$0xff] }
 0x3e2   : > { %v1150_v24 = vsel %vm581_vm8, %v1144_v5, %v1148_v49  ;;  %v1152_v22 = vsel %vm581_vm8, %v1148_v49, %v1144_v5  ;;  %v1291_v43 = vld [vmem:[%s3238_s9 + $0x38] sm:$0xff] }
 0x3e3   : > { %v1159_v28 = vmul.f32 %v1150_v24, %v2343_v48  ;;  %v1160_v36 = vmul.f32 %v1152_v22, %v3252_v42  ;;  %1223 = vmatprep.subr.bf16.mxu0 %v1138_v16 }
 0x3e4   : > { %1224 = vmatpush1.bf16.msra.mxu0 %v1137_v17 }
 0x3e5   : > { %v1161_v59 = vpack.c.bf16 %v1159_v28, %v1157_v23  ;;  %v1162_v52 = vpack.c.bf16 %v1160_v36, %v1158_v25  ;;  %v1312_v36 = vld [vmem:[%s3238_s9 + $0x40] sm:$0xff] }
 0x3e7   : > { %1225 = vmatprep.subr.bf16.mxu0 %v1162_v52  ;;  %v1313_v52 = vld [vmem:[%s3238_s9 + $0x48] sm:$0xff] }
 0x3e8   : > { %1226 = vmatpush1.bf16.msra.mxu0 %v1161_v59 }
 0x3eb   : > { %1242 = vmatmul.mubr.bf16.vlgmr.msra.gmra.mrb[4].mxu0 %v1919_v50 }
 0x3f0   : > { %v1190_v51 = vpop.permute.xlu1 %1189 }
 0x3f2   : > { %v1195_v44 = vpop.permute.xlu0 %1194 }
 0x4be   : > { %v1243_v53 = vpop.f32.mrb[4].mxu0 }
 0x4bf   : > { %v2805_v0 = vadd.f32 %v1243_v53, %v1190_v51  ;;  %v1245_v2 = vpop.f32.mrb[5].mxu0  ;;  %v1314_v53 = vld [vmem:[%s3238_s9 + $0x50] sm:$0xff] }
 0x4c0   : > { %v1247_v48 = vpop.f32.mrb[6].mxu0  ;;  %v2811_v45 = vadd.f32 %v1245_v2, %v1190_v51  ;;  %v1315_v2 = vld [vmem:[%s3238_s9 + $0x58] sm:$0xff] }
 0x4c1   : > { %v2807_v41 = vadd.f32 %v1247_v48, %v1195_v44  ;;  %v1249_v54 = vpop.f32.mrb[7].mxu0  ;;  %1252 = vrot.lane.b32.xlu1 %v2805_v0, %s1931_s23 }
 0x4c2   : > { %v2813_v5 = vadd.f32 %v1249_v54, %v1195_v44 }
 0x4c3   : > { %1254 = vrot.lane.b32.xlu0 %v2807_v41, %s1931_s23  ;;  %v1348_v63 = vpack.c.bf16 %v2807_v41, %v2805_v0 }
 0x4c4   : > { %v1349_v14 = vpack.c.bf16 %v2813_v5, %v2811_v45 }
 0x4c5   : > { %1276 = vrot.lane.b32.xlu1 %v2805_v0, %s1932_s24 }
 0x4c7   : > { %1278 = vrot.lane.b32.xlu0 %v2807_v41, %s1932_s24 }
 0x4c9   : > { %1300 = vrot.lane.b32.xlu1 %v2805_v0, %s1933_s25 }
 0x4cb   : > { %1302 = vrot.lane.b32.xlu0 %v2807_v41, %s1933_s25 }
 0x4cd   : > { %1324 = vrot.lane.b32.xlu1 %v2805_v0, %s1934_s26 }
 0x4cf   : > { %1326 = vrot.lane.b32.xlu0 %v2807_v41, %s1934_s26 }
 0x4d1   : > { %1352 = vrot.lane.b32.xlu1 %v2805_v0, %s1935_s27 }
 0x4d3   : > { %1354 = vrot.lane.b32.xlu0 %v2807_v41, %s1935_s27 }
 0x4d5   : > { %1376 = vrot.lane.b32.xlu1 %v2805_v0, %s1936_s28 }
 0x4d7   : > { %1378 = vrot.lane.b32.xlu0 %v2807_v41, %s1936_s28 }
 0x4d9   : > { %1400 = vrot.lane.b32.xlu1 %v2805_v0, %s1937_s29 }
 0x4db   : > { %1402 = vrot.lane.b32.xlu0 %v2807_v41, %s1937_s29 }
 0x4dd   : > { %1256 = vrot.lane.b32.xlu1 %v2811_v45, %s1931_s23 }
 0x4df   : > { %1258 = vrot.lane.b32.xlu0 %v2813_v5, %s1931_s23 }
 0x4e1   : > { %1280 = vrot.lane.b32.xlu1 %v2811_v45, %s1932_s24 }
 0x4e3   : > { %1282 = vrot.lane.b32.xlu0 %v2813_v5, %s1932_s24 }
 0x4e5   : > { %1304 = vrot.lane.b32.xlu1 %v2811_v45, %s1933_s25 }
 0x4e7   : > { %1306 = vrot.lane.b32.xlu0 %v2813_v5, %s1933_s25 }
 0x4e9   : > { %1328 = vrot.lane.b32.xlu1 %v2811_v45, %s1934_s26 }
 0x4eb   : > { %1330 = vrot.lane.b32.xlu0 %v2813_v5, %s1934_s26 }
 0x4ed   : > { %1424 = vrot.lane.b32.xlu1 %v2805_v0, %s1938_s13 }
 0x4ef   : > { %1426 = vrot.lane.b32.xlu0 %v2807_v41, %s1938_s13 }
 0x4f1   : > { %1356 = vrot.lane.b32.xlu1 %v2811_v45, %s1935_s27 }
 0x4f3   : > { %1358 = vrot.lane.b32.xlu0 %v2813_v5, %s1935_s27 }
 0x4f5   : > { %1380 = vrot.lane.b32.xlu1 %v2811_v45, %s1936_s28 }
 0x4f7   : > { %1382 = vrot.lane.b32.xlu0 %v2813_v5, %s1936_s28 }
 0x4f9   : > { %1404 = vrot.lane.b32.xlu1 %v2811_v45, %s1937_s29 }
 0x4fb   : > { %1406 = vrot.lane.b32.xlu0 %v2813_v5, %s1937_s29 }
 0x4fd   : > { %1428 = vrot.lane.b32.xlu1 %v2811_v45, %s1938_s13  ;;  %v1389_v45 = vld [vmem:[%s3238_s9 + $0xc8] sm:$0xff] }
 0x4ff   : > { %1430 = vrot.lane.b32.xlu0 %v2813_v5, %s1938_s13 }
 0x501   : > { %1472 = vperm.xlu1 %1880, %v1468_v13  }
 0x503   : > { %1477 = vperm.xlu0 %1879, %v1469_v10  }
 0x533   : > { %v1253_v12 = vpop.permute.xlu1 %1252 }
 0x535   : > { %v1255_v15 = vpop.permute.xlu0 %1254 }
 0x537   : > { %v1277_v18 = vpop.permute.xlu1 %1276 }
 0x539   : > { %v1279_v19 = vpop.permute.xlu0 %1278 }
 0x53b   : > { %v1301_v8 = vpop.permute.xlu1 %1300 }
 0x53d   : > { %v1303_v46 = vpop.permute.xlu0 %1302 }
 0x53f   : > { %v1325_v20 = vpop.permute.xlu1 %1324 }
 0x541   : > { %v2891_v29 = vpop.permute.xlu0 %1326 }
 0x543   : > { %v2893_v62 = vpop.permute.xlu1 %1352 }
 0x545   : > { %v2895_v4 = vpop.permute.xlu0 %1354 }
 0x547   : > { %v2897_v30 = vpop.permute.xlu1 %1376 }
 0x549   : > { %v2899_v39 = vpop.permute.xlu0 %1378 }
 0x54b   : > { %v2901_v7 = vpop.permute.xlu1 %1400 }
 0x54d   : > { %v2903_v40 = vpop.permute.xlu0 %1402 }
 0x54f   : > { %v1257_v38 = vpop.permute.xlu1 %1256 }
 0x550   : > { %v1260_v61 = vsel %vm402_vm1, %v1253_v12, %v1257_v38  ;;  %v1262_v31 = vsel %vm402_vm1, %v1257_v38, %v1253_v12 }
 0x551   : > { %v1259_v21 = vpop.permute.xlu0 %1258  ;;  %v1268_v34 = vmul.f32 %v1264_v37, %v1262_v31  ;;  %v1269_v1 = vmul.f32 %v1265_v26, %v1260_v61  ;;  %v1337_v37 = vld [vmem:[%s3238_s9 + $0x68] sm:$0xff]  ;;  %v1338_v26 = vld [vmem:[%s3238_s9 + $0x70] sm:$0xff]  ;;  %v1339_v61 = vld [vmem:[%s3238_s9 + $0x78] sm:$0xff] }
 0x552   : > { %v1261_v58 = vsel %vm402_vm1, %v1255_v15, %v1259_v21  ;;  %v1263_v60 = vsel %vm402_vm1, %v1259_v21, %v1255_v15 }
 0x553   : > { %v1270_v56 = vmul.f32 %v1266_v47, %v1263_v60  ;;  %v1271_v57 = vmul.f32 %v1267_v27, %v1261_v58  ;;  %v1281_v32 = vpop.permute.xlu1 %1280 }
 0x554   : > { %v1284_v9 = vsel %vm427_vm2, %v1277_v18, %v1281_v32  ;;  %v1286_v35 = vsel %vm427_vm2, %v1281_v32, %v1277_v18 }
 0x555   : > { %v1272_v17 = vpack.c.bf16 %v1270_v56, %v1268_v34  ;;  %v1283_v49 = vpop.permute.xlu0 %1282  ;;  %v1273_v16 = vpack.c.bf16 %v1271_v57, %v1269_v1  ;;  %v1292_v23 = vmul.f32 %v1288_v3, %v1286_v35  ;;  %v1293_v25 = vmul.f32 %v1289_v33, %v1284_v9  ;;  %v1364_v33 = vld [vmem:[%s3238_s9 + $0xa0] sm:$0xff] }
 0x556   : > { %v1285_v24 = vsel %vm427_vm2, %v1279_v19, %v1283_v49  ;;  %v1287_v22 = vsel %vm427_vm2, %v1283_v49, %v1279_v19  ;;  %v1336_v19 = vld [vmem:[%s3238_s9 + $0x60] sm:$0xff] }
 0x557   : > { %v1294_v28 = vmul.f32 %v1290_v55, %v1287_v22  ;;  %v1295_v42 = vmul.f32 %v1291_v43, %v1285_v24  ;;  %1492 = vmatprep.subr.bf16.mxu1 %v1273_v16  ;;  %v1305_v59 = vpop.permute.xlu1 %1304  ;;  %v1366_v43 = vld [vmem:[%s3238_s9 + $0xb0] sm:$0xff] }
 0x558   : > { %v1308_v50 = vsel %vm452_vm3, %v1301_v8, %v1305_v59  ;;  %v1310_v51 = vsel %vm452_vm3, %v1305_v59, %v1301_v8  ;;  %1493 = vmatpush1.bf16.msra.mxu1 %v1272_v17  ;;  %v1367_v17 = vld [vmem:[%s3238_s9 + $0xb8] sm:$0xff] }
 0x559   : > { %v1296_v44 = vpack.c.bf16 %v1294_v28, %v1292_v23  ;;  %v1307_v48 = vpop.permute.xlu0 %1306  ;;  %v1297_v54 = vpack.c.bf16 %v1295_v42, %v1293_v25  ;;  %v1316_v10 = vmul.f32 %v1312_v36, %v1310_v51  ;;  %v1317_v12 = vmul.f32 %v1313_v52, %v1308_v50  ;;  %v1388_v28 = vld [vmem:[%s3238_s9 + $0xc0] sm:$0xff]  ;;  %v1391_v36 = vld [vmem:[%s3238_s9 + $0xd8] sm:$0xff] }
 0x55a   : > { %v1309_v6 = vsel %vm452_vm3, %v1303_v46, %v1307_v48  ;;  %v1311_v13 = vsel %vm452_vm3, %v1307_v48, %v1303_v46  ;;  %v1413_v48 = vld [vmem:[%s3238_s9 + $0xe8] sm:$0xff] }
 0x55b   : > { %v1318_v15 = vmul.f32 %v1314_v53, %v1311_v13  ;;  %v1319_v18 = vmul.f32 %v1315_v2, %v1309_v6  ;;  %1494 = vmatprep.subr.bf16.mxu1 %v1297_v54  ;;  %v1329_v8 = vpop.permute.xlu1 %1328  ;;  %v1412_v2 = vld [vmem:[%s3238_s9 + $0xe0] sm:$0xff]  ;;  %v1414_v6 = vld [vmem:[%s3238_s9 + $0xf0] sm:$0xff]  ;;  %v1415_v13 = vld [vmem:[%s3238_s9 + $0xf8] sm:$0xff] }
 0x55c   : > { %v1332_v38 = vsel %vm477_vm4, %v1325_v20, %v1329_v8  ;;  %v1334_v46 = vsel %vm477_vm4, %v1329_v8, %v1325_v20  ;;  %1495 = vmatpush1.bf16.msra.mxu1 %v1296_v44 }
 0x55d   : > { %v1320_v31 = vpack.c.bf16 %v1318_v15, %v1316_v10  ;;  %v1331_v47 = vpop.permute.xlu0 %1330  ;;  %v1321_v27 = vpack.c.bf16 %v1319_v18, %v1317_v12  ;;  %v1340_v58 = vmul.f32 %v1336_v19, %v1334_v46  ;;  %v1341_v60 = vmul.f32 %v1337_v37, %v1332_v38  ;;  %v1436_v46 = vld [vmem:[%s3238_s9 + $0x100] sm:$0xff] }
 0x55e   : > { %v1333_v21 = vsel %vm477_vm4, %v2891_v29, %v1331_v47  ;;  %v1335_v20 = vsel %vm477_vm4, %v1331_v47, %v2891_v29  ;;  %v1365_v29 = vld [vmem:[%s3238_s9 + $0xa8] sm:$0xff]  ;;  %v1438_v47 = vld [vmem:[%s3238_s9 + $0x110] sm:$0xff] }
 0x55f   : > { %v1342_v34 = vmul.f32 %v1338_v26, %v1335_v20  ;;  %v1343_v1 = vmul.f32 %v1339_v61, %v1333_v21  ;;  %1496 = vmatprep.subr.bf16.mxu1 %v1321_v27  ;;  %v2987_v56 = vpop.permute.xlu1 %1424  ;;  %v1437_v61 = vld [vmem:[%s3238_s9 + $0x108] sm:$0xff]  ;;  %v1439_v27 = vld [vmem:[%s3238_s9 + $0x118] sm:$0xff] }
 0x560   : > { %1497 = vmatpush1.bf16.msra.mxu1 %v1320_v31 }
 0x561   : > { %v1344_v57 = vpack.c.bf16 %v1342_v34, %v1340_v58  ;;  %v2989_v3 = vpop.permute.xlu0 %1426  ;;  %v1345_v32 = vpack.c.bf16 %v1343_v1, %v1341_v60 }
 0x563   : > { %1498 = vmatprep.subr.bf16.mxu1 %v1345_v32  ;;  %v1357_v9 = vpop.permute.xlu1 %1356 }
 0x564   : > { %v1360_v35 = vsel %vm506_vm5, %v2893_v62, %v1357_v9  ;;  %v1362_v55 = vsel %vm506_vm5, %v1357_v9, %v2893_v62  ;;  %1499 = vmatpush1.bf16.msra.mxu1 %v1344_v57 }
 0x565   : > { %v1359_v49 = vpop.permute.xlu0 %1358  ;;  %1500 = vmatprep.subr.bf16.mxu1 %v1349_v14  ;;  %v1368_v24 = vmul.f32 %v1364_v33, %v1360_v35  ;;  %v1369_v22 = vmul.f32 %v1365_v29, %v1362_v55  ;;  %v1922_v29 = vld [vmem:[%s3236_s7] ss:$8 sps:$4 sm:$0xff]  }
 0x566   : > { %v1361_v16 = vsel %vm506_vm5, %v2895_v4, %v1359_v49  ;;  %v1363_v62 = vsel %vm506_vm5, %v1359_v49, %v2895_v4  ;;  %v1390_v4 = vld [vmem:[%s3238_s9 + $0xd0] sm:$0xff]  ;;  %v1603_v35 = vld [vmem:[%s3239_s10 + $0x80] sm:$0xff] }
 0x567   : > { %v1370_v23 = vmul.f32 %v1366_v43, %v1361_v16  ;;  %v1371_v25 = vmul.f32 %v1367_v17, %v1363_v62  ;;  %v1381_v42 = vpop.permute.xlu1 %1380  ;;  %v1587_v55 = vld [vmem:[%s3239_s10] sm:$0xff]  ;;  %v1588_v17 = vld [vmem:[%s3239_s10 + $0x8] sm:$0xff]  ;;  %v1605_v49 = vld [vmem:[%s3239_s10 + $0x90] sm:$0xff] }
 0x568   : > { %v1384_v5 = vsel %vm531_vm6, %v2897_v30, %v1381_v42  ;;  %v1386_v14 = vsel %vm531_vm6, %v1381_v42, %v2897_v30  ;;  %1501 = vmatpush1.bf16.msra.mxu1 %v1348_v63  ;;  %v1606_v16 = vld [vmem:[%s3239_s10 + $0x98] sm:$0xff]  ;;  %v1816_v62 = vpack.c.bf16 %v1588_v17, %v1587_v55 }
 0x569   : > { %v1372_v59 = vpack.c.bf16 %v1370_v23, %v1368_v24  ;;  %v1383_v52 = vpop.permute.xlu0 %1382  ;;  %v1373_v50 = vpack.c.bf16 %v1371_v25, %v1369_v22  ;;  %v1392_v41 = vmul.f32 %v1388_v28, %v1384_v5  ;;  %v1393_v63 = vmul.f32 %v1389_v45, %v1386_v14  ;;  %v1589_v22 = vld [vmem:[%s3239_s10 + $0x10] sm:$0xff]  ;;  %v1590_v23 = vld [vmem:[%s3239_s10 + $0x18] sm:$0xff]  ;;  %v1607_v25 = vld [vmem:[%s3239_s10 + $0xa0] sm:$0xff] }
 0x56a   : > { %v1385_v51 = vsel %vm531_vm6, %v2899_v39, %v1383_v52  ;;  %v1387_v0 = vsel %vm531_vm6, %v1383_v52, %v2899_v39  ;;  %v1818_v24 = vpack.c.bf16 %v1606_v16, %v1605_v49  ;;  %v1608_v28 = vld [vmem:[%s3239_s10 + $0xa8] sm:$0xff]  ;;  %v1820_v42 = vpack.c.bf16 %v1590_v23, %v1589_v22  ;;  %v1591_v5 = vld [vmem:[%s3239_s10 + $0x20] sm:$0xff] }
 0x56b   : > { %v1394_v30 = vmul.f32 %v1390_v4, %v1385_v51  ;;  %v1395_v53 = vmul.f32 %v1391_v36, %v1387_v0  ;;  %v1405_v44 = vpop.permute.xlu1 %1404  ;;  %1502 = vmatprep.subr.bf16.mxu1 %v1373_v50  ;;  %v1822_v45 = vpack.c.bf16 %v1608_v28, %v1607_v25  ;;  %v1592_v14 = vld [vmem:[%s3239_s10 + $0x28] sm:$0xff]  ;;  %v1609_v4 = vld [vmem:[%s3239_s10 + $0xb0] sm:$0xff]  ;;  %v1610_v36 = vld [vmem:[%s3239_s10 + $0xb8] sm:$0xff] }
 0x56c   : > { %v1408_v54 = vsel %vm556_vm7, %v2901_v7, %v1405_v44  ;;  %v1410_v39 = vsel %vm556_vm7, %v1405_v44, %v2901_v7  ;;  %1503 = vmatpush1.bf16.msra.mxu1 %v1372_v59  ;;  %v1824_v59 = vpack.c.bf16 %v1592_v14, %v1591_v5  ;;  %v1826_v52 = vpack.c.bf16 %v1610_v36, %v1609_v4  ;;  %v1593_v50 = vld [vmem:[%s3239_s10 + $0x30] sm:$0xff]  ;;  %v1594_v51 = vld [vmem:[%s3239_s10 + $0x38] sm:$0xff] }
 0x56d   : > { %v1396_v10 = vpack.c.bf16 %v1394_v30, %v1392_v41  ;;  %v1407_v12 = vpop.permute.xlu0 %1406  ;;  %v1397_v15 = vpack.c.bf16 %v1395_v53, %v1393_v63  ;;  %v1416_v19 = vmul.f32 %v1412_v2, %v1408_v54  ;;  %v1417_v8 = vmul.f32 %v1413_v48, %v1410_v39  ;;  %v1611_v41 = vld [vmem:[%s3239_s10 + $0xc0] sm:$0xff]  ;;  %v1612_v63 = vld [vmem:[%s3239_s10 + $0xc8] sm:$0xff]  ;;  %v1613_v48 = vld [vmem:[%s3239_s10 + $0xd0] sm:$0xff] }
 0x56e   : > { %v1409_v18 = vsel %vm556_vm7, %v2903_v40, %v1407_v12  ;;  %v1411_v7 = vsel %vm556_vm7, %v1407_v12, %v2903_v40  ;;  %v1828_v0 = vpack.c.bf16 %v1594_v51, %v1593_v50  ;;  %v1830_v30 = vpack.c.bf16 %v1612_v63, %v1611_v41  ;;  %v1595_v53 = vld [vmem:[%s3239_s10 + $0x40] sm:$0xff]  ;;  %v1596_v2 = vld [vmem:[%s3239_s10 + $0x48] sm:$0xff]  ;;  %v1614_v54 = vld [vmem:[%s3239_s10 + $0xd8] sm:$0xff] }
 0x56f   : > { %v1418_v37 = vmul.f32 %v1414_v6, %v1409_v18  ;;  %v1419_v38 = vmul.f32 %v1415_v13, %v1411_v7  ;;  %v1429_v26 = vpop.permute.xlu1 %1428  ;;  %1504 = vmatprep.subr.bf16.mxu1 %v1397_v15  ;;  %v1832_v44 = vpack.c.bf16 %v1596_v2, %v1595_v53  ;;  %v1834_v39 = vpack.c.bf16 %v1614_v54, %v1613_v48  ;;  %v1597_v6 = vld [vmem:[%s3239_s10 + $0x50] sm:$0xff]  ;;  %v1598_v13 = vld [vmem:[%s3239_s10 + $0x58] sm:$0xff]  ;;  %v1615_v7 = vld [vmem:[%s3239_s10 + $0xe0] sm:$0xff] }
 0x570   : > { %v1432_v31 = vsel %vm581_vm8, %v2987_v56, %v1429_v26  ;;  %v1434_v40 = vsel %vm581_vm8, %v1429_v26, %v2987_v56  ;;  %1505 = vmatpush1.bf16.msra.mxu1 %v1396_v10  ;;  %v1836_v10 = vpack.c.bf16 %v1598_v13, %v1597_v6  ;;  %v1600_v26 = vld [vmem:[%s3239_s10 + $0x68] sm:$0xff] }
 0x571   : > { %v1420_v21 = vpack.c.bf16 %v1418_v37, %v1416_v19  ;;  %v1431_v20 = vpop.permute.xlu0 %1430  ;;  %v1421_v58 = vpack.c.bf16 %v1419_v38, %v1417_v8  ;;  %v1440_v1 = vmul.f32 %v1436_v46, %v1432_v31  ;;  %v1441_v56 = vmul.f32 %v1437_v61, %v1434_v40  ;;  %v1616_v19 = vld [vmem:[%s3239_s10 + $0xe8] sm:$0xff]  ;;  %v1599_v46 = vld [vmem:[%s3239_s10 + $0x60] sm:$0xff] }
 0x572   : > { %v1433_v60 = vsel %vm581_vm8, %v2989_v3, %v1431_v20  ;;  %v1435_v34 = vsel %vm581_vm8, %v1431_v20, %v2989_v3  ;;  %v1604_v3 = vld [vmem:[%s3239_s10 + $0x88] sm:$0xff]  ;;  %v1838_v38 = vpack.c.bf16 %v1616_v19, %v1615_v7 }
 0x573   : > { %v1442_v57 = vmul.f32 %v1438_v47, %v1433_v60  ;;  %v1443_v32 = vmul.f32 %v1439_v27, %v1435_v34  ;;  %1506 = vmatprep.subr.bf16.mxu1 %v1421_v58  ;;  %v1814_v43 = vpack.c.bf16 %v1604_v3, %v1603_v35  ;;  %v1840_v47 = vpack.c.bf16 %v1600_v26, %v1599_v46  ;;  %v1617_v58 = vld [vmem:[%s3239_s10 + $0xf0] sm:$0xff]  ;;  %v1618_v60 = vld [vmem:[%s3239_s10 + $0xf8] sm:$0xff] }
 0x574   : > { %1507 = vmatpush1.bf16.msra.mxu1 %v1420_v21 }
 0x575   : > { %v1444_v33 = vpack.c.bf16 %v1442_v57, %v1440_v1  ;;  %v1445_v9 = vpack.c.bf16 %v1443_v32, %v1441_v56  ;;  %1815 = vmatprep.subr.bf16.mxu0 %v1814_v43  ;;  %v1842_v1 = vpack.c.bf16 %v1618_v60, %v1617_v58  ;;  %v1601_v56 = vld [vmem:[%s3239_s10 + $0x70] sm:$0xff]  ;;  %v1602_v57 = vld [vmem:[%s3239_s10 + $0x78] sm:$0xff] }
 0x576   : > { %1817 = vmatpush3.bf16.msra.mxu0 %v1816_v62  ;;  %v1844_v32 = vpack.c.bf16 %v1602_v57, %v1601_v56 }
 0x577   : > { %1508 = vmatprep.subr.bf16.mxu1 %v1445_v9  ;;  %1819 = vmatprep.subr.bf16.mxu0 %v1818_v24 }
 0x578   : > { %1509 = vmatpush1.bf16.msra.mxu1 %v1444_v33 }
 0x579   : > { %1846 = vmatprep.subr.bf16.mxu1 %v1814_v43 }
 0x57a   : > { %1821 = vmatpush3.bf16.msra.mxu0 %v1820_v42 }
 0x57b   : > { %1525 = vmatmul.mubr.bf16.vlgmr.msra.gmra.mrb[4].mxu1 %v1922_v29  ;;  %1823 = vmatprep.subr.bf16.mxu0 %v1822_v45 }
 0x57c   : > { %1854 = vmatpush3.bf16.msra.mxu1 %v1816_v62 }
 0x57d   : > { %1847 = vmatprep.subr.bf16.mxu1 %v1818_v24 }
 0x57e   : > { %1825 = vmatpush3.bf16.msra.mxu0 %v1824_v59 }
 0x57f   : > { %1827 = vmatprep.subr.bf16.mxu0 %v1826_v52 }
 0x580   : > { %1855 = vmatpush3.bf16.msra.mxu1 %v1820_v42  ;;  %v1473_v15 = vpop.permute.xlu1 %1472 }
 0x581   : > { %1848 = vmatprep.subr.bf16.mxu1 %v1822_v45 }
 0x582   : > { %1829 = vmatpush3.bf16.msra.mxu0 %v1828_v0  ;;  %v1478_v8 = vpop.permute.xlu0 %1477 }
 0x583   : > { %1831 = vmatprep.subr.bf16.mxu0 %v1830_v30 }
 0x584   : > { %1856 = vmatpush3.bf16.msra.mxu1 %v1824_v59 }
 0x585   : > { %1849 = vmatprep.subr.bf16.mxu1 %v1826_v52 }
 0x586   : > { %1833 = vmatpush3.bf16.msra.mxu0 %v1832_v44 }
 0x587   : > { %1835 = vmatprep.subr.bf16.mxu0 %v1834_v39 }
 0x588   : > { %1857 = vmatpush3.bf16.msra.mxu1 %v1828_v0 }
 0x589   : > { %1850 = vmatprep.subr.bf16.mxu1 %v1830_v30 }
 0x58a   : > { %1837 = vmatpush3.bf16.msra.mxu0 %v1836_v10 }
 0x58b   : > { %1839 = vmatprep.subr.bf16.mxu0 %v1838_v38 }
 0x58c   : > { %1858 = vmatpush3.bf16.msra.mxu1 %v1832_v44 }
 0x58d   : > { %1851 = vmatprep.subr.bf16.mxu1 %v1834_v39 }
 0x58e   : > { %1841 = vmatpush3.bf16.msra.mxu0 %v1840_v47 }
 0x58f   : > { %1843 = vmatprep.subr.bf16.mxu0 %v1842_v1 }
 0x590   : > { %1859 = vmatpush3.bf16.msra.mxu1 %v1836_v10 }
 0x591   : > { %1852 = vmatprep.subr.bf16.mxu1 %v1838_v38 }
 0x592   : > { %1845 = vmatpush3.bf16.msra.mxu0 %v1844_v32 }
 0x594   : > { %1860 = vmatpush3.bf16.msra.mxu1 %v1840_v47 }
 0x595   : > { %1853 = vmatprep.subr.bf16.mxu1 %v1842_v1 }
 0x598   : > { %1861 = vmatpush3.bf16.msra.mxu1 %v1844_v32 }
 0x64e   : > { %v1526_v12 = vpop.f32.mrb[4].mxu1 }
 0x64f   : > { %v1528_v18 = vpop.f32.mrb[5].mxu1  ;;  %v1527_v61 = vadd.f32 %v1526_v12, %v1473_v15 }
 0x650   : > { %v1530_v37 = vpop.f32.mrb[6].mxu1  ;;  %v1529_v27 = vadd.f32 %v1528_v18, %v1473_v15 }
 0x651   : > { %v1531_v31 = vadd.f32 %v1530_v37, %v1478_v8  ;;  %v1532_v40 = vpop.f32.mrb[7].mxu1 }
 0x652   : > { %v1533_v21 = vadd.f32 %v1532_v40, %v1478_v8 }
 0x653   : > { %v1881_v20 = vpack.i.bf16 %v1531_v31, %v1527_v61 }
 0x654   : > { %v1891_v34 = vpack.i.bf16 %v1533_v21, %v1529_v27 }
 0x655   : > { %1882 = vrot.lane.b32.xlu1 %v1881_v20, %s1935_s27 }
 0x656   : > { %1892 = vrot.lane.b32.xlu0 %v1891_v34, %s1935_s27  ;;  %s1775_s27 = sshll.u32 %s3254_s18, 4 }
 0x657   : > { %s386_s15 = scalar_lea.vmem %s3240_s11, %s1775_s27 }
 0x659   : > { %1887 = vrot.lane.b32.xlu1 %v1881_v20, %s1937_s29 }
 0x65a   : > { %1897 = vrot.lane.b32.xlu0 %v1891_v34, %s1937_s29 }
 0x65d   : > { %1902 = vrot.lane.b32.xlu1 %v1881_v20, %s1938_s13 }
 0x65e   : > { %1907 = vrot.lane.b32.xlu0 %v1891_v34, %s1938_s13 }
 0x6c7   : > { %v1883_v33 = vpop.permute.xlu1 %1882 }
 0x6c8   : > { %v1885_v9 = vunpack.i.h.bf16 %v1883_v33  ;;  %v1884_v29 = vunpack.i.l.bf16 %v1883_v33  ;;  %v1893_v35 = vpop.permute.xlu0 %1892 }
 0x6c9   : > { %v1895_v3 = vunpack.i.h.bf16 %v1893_v35  ;;  %v1894_v55 = vunpack.i.l.bf16 %v1893_v35 }
 0x6cb   : > { %v1543_v43 = vsel %vm506_vm5, %v1884_v29, %v1894_v55  ;;  %v1545_v17 = vsel %vm506_vm5, %v1894_v55, %v1884_v29  ;;  %v1888_v49 = vpop.permute.xlu1 %1887  ;;  %v1544_v16 = vsel %vm506_vm5, %v1885_v9, %v1895_v3  ;;  %v1546_v62 = vsel %vm506_vm5, %v1895_v3, %v1885_v9 }
 0x6cc   : > { %v1898_v24 = vpop.permute.xlu0 %1897  ;;  %v1890_v22 = vunpack.i.h.bf16 %v1888_v49  ;;  %v1889_v23 = vunpack.i.l.bf16 %v1888_v49  ;;  %v1547_v42 = vmax.f32 %v1527_v61, %v1543_v43  ;;  %v1548_v45 = vmax.f32 %v1529_v27, %v1545_v17 }
 0x6cd   : > { %v1900_v25 = vunpack.i.h.bf16 %v1898_v24  ;;  %v1899_v28 = vunpack.i.l.bf16 %v1898_v24  ;;  %v1549_v52 = vmax.f32 %v1531_v31, %v1544_v16  ;;  %v1550_v50 = vmax.f32 %v1533_v21, %v1546_v62 }
 0x6cf   : > { %v1559_v5 = vsel %vm556_vm7, %v1889_v23, %v1899_v28  ;;  %v1560_v14 = vsel %vm556_vm7, %v1890_v22, %v1900_v25  ;;  %v1561_v4 = vsel %vm556_vm7, %v1899_v28, %v1889_v23  ;;  %v1562_v36 = vsel %vm556_vm7, %v1900_v25, %v1890_v22  ;;  %v1903_v59 = vpop.permute.xlu1 %1902 }
 0x6d0   : > { %v1905_v51 = vunpack.i.h.bf16 %v1903_v59  ;;  %v1904_v0 = vunpack.i.l.bf16 %v1903_v59  ;;  %v1908_v41 = vpop.permute.xlu0 %1907  ;;  %v1563_v53 = vmax.f32 %v1547_v42, %v1559_v5  ;;  %v1565_v2 = vmax.f32 %v1549_v52, %v1560_v14 }
 0x6d1   : > { %v1910_v63 = vunpack.i.h.bf16 %v1908_v41  ;;  %v1909_v30 = vunpack.i.l.bf16 %v1908_v41  ;;  %v1564_v44 = vmax.f32 %v1548_v45, %v1561_v4  ;;  %v1566_v48 = vmax.f32 %v1550_v50, %v1562_v36 }
 0x6d3   : > { %v1575_v54 = vsel %vm581_vm8, %v1904_v0, %v1909_v30  ;;  %v1576_v39 = vsel %vm581_vm8, %v1905_v51, %v1910_v63  ;;  %v1577_v6 = vsel %vm581_vm8, %v1909_v30, %v1904_v0  ;;  %v1578_v13 = vsel %vm581_vm8, %v1910_v63, %v1905_v51 }
 0x6d4   : > { %v1579_v10 = vmax.f32 %v1563_v53, %v1575_v54  ;;  %v1581_v12 = vmax.f32 %v1565_v2, %v1576_v39  ;;  %v1580_v15 = vmax.f32 %v1564_v44, %v1577_v6  ;;  %v1582_v18 = vmax.f32 %v1566_v48, %v1578_v13 }
 0x6d6   : > { %v1583_v7 = vmax.f32 %v1579_v10, 0.0  ;;  %v1585_v19 = vmax.f32 %v1581_v12, 0.0  ;;  %v1584_v8 = vmax.f32 %v1580_v15, 0.0  ;;  %v1586_v37 = vmax.f32 %v1582_v18, 0.0 }
 0x6d8   : > { %1683 = vmatprep.mubr.f32.mxu0 %v1584_v8  ;;  %1688 = vmatprep.mubr.f32.mxu1 %v1586_v37 }
 0x6d9   : > { %1684 = vmatmul.mubr.f32.vlgmr.msra.gmra.mrb[8].mxu0 %v1583_v7  ;;  %1689 = vmatmul.mubr.f32.vlgmr.msra.gmra.mrb[8].mxu1 %v1585_v19 }
 0x7ac   : > { %v1808_v38 = vpop.f32.mrb[8].mxu0  ;;  %v1811_v46 = vpop.f32.mrb[8].mxu1 }
 0x7ad   : > { %v1809_v11 = vpop.f32.mrb[9].mxu0  ;;  %v1812_v26 = vpop.f32.mrb[9].mxu1 }
 0x7ae   : > { %v1810_v61 = vadd.f32 %v1809_v11, %v1808_v38  ;;  %v1813_v31 = vadd.f32 %v1812_v26, %v1811_v46 }
 0x7b0   : > { %1694 = vst [vmem:[%s386_s15] sm:$0xff] %v1810_v61  ;;  %1695 = vst [vmem:[%s386_s15 + $0x8] sm:$0xff] %v1813_v31 }
 0x7b1 PF: > { %s21_s17 = sadd.s32 1, %s1929_s17  }
 0x7b2   : > { %p18_p4 = scmp.ge.s32.totalorder %s21_s17, 4  }
 0x7b4   :  { %20 = sbr.rel (!%p18_p4) target bundleno = 1 (0x1), region = 94 }

</bundles_post_ra>
